<compile_context>
chip_gen: v7x
topology: tpu7x:2x2x1
jax: 0.10.0
libtpu: 0.0.40
codegen_flags: <defaults>
</compile_context>

<pallas_src>
import jax
import jax.numpy as jnp
from jax import lax
from jax.experimental import pallas as pl
from jax.experimental.pallas import tpu as pltpu

BN_EPS = 1e-6


def _layer_dims(dim, num_hiddens):
    dims = [(dim, num_hiddens[0])]
    for i in range(len(num_hiddens) - 1):
        dims.append((num_hiddens[i], num_hiddens[i + 1]))
    dims.append((num_hiddens[-1], dim))
    return dims


def make_bsde_kernel(num_hiddens, dim, delta_t, lambd, n_steps):
    """Single-invocation kernel: whole forward pass, everything resident."""
    n_dense = len(num_hiddens) + 1          # dense layers in Feedforward_NN
    n_bn = len(num_hiddens) + 2             # batch-norm layers in Feedforward_NN
    inv_dim = 1.0 / float(dim)
    T = n_steps

    def kernel(*refs):
        # ---- unpack refs (inputs then output) ----
        x_ref = refs[0]                     # [T, B, dim] : x[:, :, t+1], t = 0..T-1
        dw_ref = refs[1]                    # [T, B, dim] : dw[:, :, t],  t = 0..T-1
        w_refs = refs[2:2 + n_dense]                                    # [T, fi, fo]
        g_refs = refs[2 + n_dense:2 + n_dense + n_bn]                   # [T, 1, f]
        b_refs = refs[2 + n_dense + n_bn:2 + n_dense + 2 * n_bn]        # [T, 1, f]
        yinit_ref = refs[2 + n_dense + 2 * n_bn]                        # SMEM (1, 1)
        zinit_ref = refs[3 + n_dense + 2 * n_bn]                        # VMEM (1, dim)
        y_out_ref = refs[4 + n_dense + 2 * n_bn]                        # VMEM (B, 1)

        def bn(v, g_ref, b_ref):
            # training-mode BatchNorm1d, per time step (stats over the batch axis),
            # fused single-pass statistics.
            mu = jnp.mean(v, axis=1, keepdims=True)
            var = jnp.mean(v * v, axis=1, keepdims=True) - mu * mu
            return (v - mu) * lax.rsqrt(var + BN_EPS) * g_ref[...] + b_ref[...]

        # ---- batched feedforward over the whole time axis (no serial grid) ----
        # z_net[s] = Feedforward_NN_s(x[:, :, s+1]) / dim
        h = bn(x_ref[...], g_refs[0], b_refs[0])
        for li in range(n_dense):
            h = jnp.einsum('tbi,tio->tbo', h, w_refs[li][...],
                           preferred_element_type=jnp.float32)
            h = bn(h, g_refs[li + 1], b_refs[li + 1])
            if li < n_dense - 1:
                h = jnp.maximum(h, 0.0)
        z_net = h * inv_dim                                       # [T, B, dim]

        # ---- y recursion collapsed to a vectorized sum ----
        # sum(z @ dw_t.T, axis=1) == z @ colsum(dw_t): VPU work only, no [B,B] matmul.
        dwcs = jnp.sum(dw_ref[...], axis=1, keepdims=True)        # [T, 1, dim]

        # update t = 0 uses (z_init, dw[0])
        z0 = zinit_ref[...]                                               # [1, dim]
        f0 = -lambd * jnp.sum(z0 * z0, axis=-1, keepdims=True)            # [1, 1]
        d0 = jnp.sum(z0 * dwcs[0], axis=-1, keepdims=True)                # [1, 1]
        term_init = delta_t * f0 + d0                                     # [1, 1]

        # every z_net[s] contributes exactly one f-term; its dw partner is
        # dw[s+1] for s < T-1 and dw[T-1] again for s = T-1 (the PyTorch code
        # reuses the final loop index for the last extra y update).
        f_all = -lambd * jnp.sum(z_net * z_net, axis=-1, keepdims=True)   # [T, B, 1]
        f_sum = jnp.sum(f_all, axis=0)                                    # [B, 1]

        if T > 1:
            d_main = jnp.sum(z_net[:T - 1] * dwcs[1:T], axis=-1, keepdims=True)
            d_sum = jnp.sum(d_main, axis=0)                               # [B, 1]
        else:
            d_sum = jnp.zeros_like(f_sum)
        d_last = jnp.sum(z_net[T - 1] * dwcs[T - 1], axis=-1, keepdims=True)  # [B, 1]

        y0 = yinit_ref[0, 0]                                              # scalar (SMEM)
        y_out_ref[...] = y0 - term_init - (delta_t * f_sum + d_sum + d_last)

    return kernel


def init_params(key, dim, num_hiddens, n_steps, y_init_range=(0.0, 1.0)):
    """Deterministic synthetic parameters (same shapes as the PyTorch module)."""
    k_w, k_y, k_z = jax.random.split(key, 3)
    ld = _layer_dims(dim, num_hiddens)
    Ws = []
    for k, (fi, fo) in zip(jax.random.split(k_w, len(ld)), ld):
        bound = 1.0 / (fi ** 0.5)
        Ws.append(jax.random.uniform(k, (n_steps, fi, fo), jnp.float32,
                                     -bound, bound))
    bn_dims = [dim] + list(num_hiddens) + [dim]
    gammas = [jnp.ones((n_steps, 1, f), jnp.float32) for f in bn_dims]
    betas = [jnp.zeros((n_steps, 1, f), jnp.float32) for f in bn_dims]
    y_init = jax.random.uniform(k_y, (1, 1), jnp.float32,
                                y_init_range[0], y_init_range[1])
    z_init = jax.random.uniform(k_z, (1, dim), jnp.float32, -0.1, 0.1)
    return dict(W=Ws, gamma=gammas, beta=betas, y_init=y_init, z_init=z_init)


def bsde_nn_forward(dw, x, params, *, delta_t, lambd, dim, num_hiddens):
    """Wrapper: time-major layout plumbing + single grid-less pallas_call."""
    B, d, N = x.shape
    assert d == dim
    n_steps = N - 1

    # layout plumbing only (done once): [B, dim, N] -> time-major [T, B, dim]
    x_tail = jnp.transpose(x[:, :, 1:], (2, 0, 1)).astype(jnp.float32)
    dw_head = jnp.transpose(dw[:, :, :n_steps], (2, 0, 1)).astype(jnp.float32)

    n_dense = len(num_hiddens) + 1
    n_bn = len(num_hiddens) + 2

    def vmem():
        return pl.BlockSpec(memory_space=pltpu.MemorySpace.VMEM)

    in_specs = ([vmem(), vmem()]                         # x_tail, dw_head
                + [vmem() for _ in range(n_dense)]       # stacked dense weights
                + [vmem() for _ in range(2 * n_bn)]      # gammas + betas
                + [pl.BlockSpec(memory_space=pltpu.MemorySpace.SMEM),  # y_init
                   vmem()])                              # z_init

    kernel = make_bsde_kernel(num_hiddens, dim, float(delta_t), float(lambd),
                              n_steps)

    return pl.pallas_call(
        kernel,
        out_shape=jax.ShapeDtypeStruct((B, 1), jnp.float32),
        in_specs=in_specs,
        out_specs=pl.BlockSpec(memory_space=pltpu.MemorySpace.VMEM),
    )(x_tail, dw_head,
      *params["W"], *params["gamma"], *params["beta"],
      params["y_init"], params["z_init"])


def bsde_nn_reference(dw, x, params, *, delta_t, lambd, dim, num_hiddens):
    """Pure-JAX replica of the PyTorch forward (for validation)."""
    B, d, N = x.shape
    x_tm = jnp.transpose(x, (2, 0, 1)).astype(jnp.float32)
    dw_tm = jnp.transpose(dw, (2, 0, 1)).astype(jnp.float32)
    ones = jnp.ones((B, 1), jnp.float32)
    y = ones * params["y_init"][0, 0]
    z = ones @ params["z_init"]

    def bn(v, g, b):
        mu = jnp.mean(v, axis=0, keepdims=True)
        var = jnp.mean((v - mu) ** 2, axis=0, keepdims=True)
        return (v - mu) / jnp.sqrt(var + BN_EPS) * g + b

    def y_step(y, z, t):
        f = -lambd * jnp.sum(z * z, axis=1, keepdims=True)
        zdw = jnp.sum(z @ dw_tm[t].T, axis=1, keepdims=True)
        return y - (delta_t * f + zdw)

    n_dense = len(num_hiddens) + 1
    for t in range(N - 1):
        y = y_step(y, z, t)
        h = bn(x_tm[t + 1], params["gamma"][0][t, 0], params["beta"][0][t, 0])
        for li in range(n_dense):
            h = h @ params["W"][li][t]
            h = bn(h, params["gamma"][li + 1][t, 0], params["beta"][li + 1][t, 0])
            if li < n_dense - 1:
                h = jnp.maximum(h, 0.0)
        z = h / float(dim)
    y = y_step(y, z, N - 2)   # reproduces the reused loop index in the PyTorch code
    return y


if __name__ == "__main__":
    B, dim, N = 16, 8, 6          # batch, eqn dim, num_time_interval
    num_hiddens = [16, 16]
    total_time = 1.0
    delta_t = total_time / N
    lambd = 1.0                   # HJB equation parameter

    key = jax.random.PRNGKey(0)
    k_dw, k_x, k_p = jax.random.split(key, 3)
    dw = jax.random.normal(k_dw, (B, dim, N), jnp.float32) * (delta_t ** 0.5)
    x = jax.random.normal(k_x, (B, dim, N), jnp.float32)
    params = init_params(k_p, dim, num_hiddens, N - 1)

    y = bsde_nn_forward(dw, x, params, delta_t=delta_t, lambd=lambd,
                        dim=dim, num_hiddens=num_hiddens)
    y = jax.block_until_ready(y)

    y_ref = bsde_nn_reference(dw, x, params, delta_t=delta_t, lambd=lambd,
                              dim=dim, num_hiddens=num_hiddens)
    assert y.shape == (B, 1)
    assert jnp.allclose(y, y_ref, rtol=1e-4, atol=1e-4), (y, y_ref)
    print("KERNEL_OK")
</pallas_src>

<mosaic_0001>
module attributes {stable_mosaic.version = 11 : i64} {
  func.func @kernel(%arg0: memref<5x16x8xf32, #tpu.memory_space<vmem>>, %arg1: memref<5x16x8xf32, #tpu.memory_space<vmem>>, %arg2: memref<5x8x16xf32, #tpu.memory_space<vmem>>, %arg3: memref<5x16x16xf32, #tpu.memory_space<vmem>>, %arg4: memref<5x16x8xf32, #tpu.memory_space<vmem>>, %arg5: memref<5x1x8xf32, #tpu.memory_space<vmem>>, %arg6: memref<5x1x16xf32, #tpu.memory_space<vmem>>, %arg7: memref<5x1x16xf32, #tpu.memory_space<vmem>>, %arg8: memref<5x1x8xf32, #tpu.memory_space<vmem>>, %arg9: memref<5x1x8xf32, #tpu.memory_space<vmem>>, %arg10: memref<5x1x16xf32, #tpu.memory_space<vmem>>, %arg11: memref<5x1x16xf32, #tpu.memory_space<vmem>>, %arg12: memref<5x1x8xf32, #tpu.memory_space<vmem>>, %arg13: memref<1x1xf32, #tpu.memory_space<smem>>, %arg14: memref<1x8xf32, #tpu.memory_space<vmem>>, %arg15: memref<16x1xf32, #tpu.memory_space<vmem>>) attributes {dimension_semantics = [], scalar_prefetch = 0 : i64, scratch_operands = 0 : i64, tpu.core_type = #tpu.core_type<tc>} {
    %c0 = arith.constant 0 : index
    %c0_0 = arith.constant 0 : index
    %c0_1 = arith.constant 0 : index
    %0 = vector.load %arg0[%c0, %c0_0, %c0_1] : memref<5x16x8xf32, #tpu.memory_space<vmem>>, vector<5x16x8xf32>
    %cst = arith.constant dense<0.000000e+00> : vector<5x8xf32>
    %1 = vector.multi_reduction <add>, %0, %cst [1] : vector<5x16x8xf32> to vector<5x8xf32>
    %2 = vector.shape_cast %1 : vector<5x8xf32> to vector<5x1x8xf32>
    %cst_2 = arith.constant 1.600000e+01 : f32
    %3 = vector.broadcast %cst_2 : f32 to vector<5x1x8xf32>
    %4 = arith.divf %2, %3 : vector<5x1x8xf32>
    %5 = arith.mulf %0, %0 : vector<5x16x8xf32>
    %cst_3 = arith.constant dense<0.000000e+00> : vector<5x8xf32>
    %6 = vector.multi_reduction <add>, %5, %cst_3 [1] : vector<5x16x8xf32> to vector<5x8xf32>
    %7 = vector.shape_cast %6 : vector<5x8xf32> to vector<5x1x8xf32>
    %cst_4 = arith.constant 1.600000e+01 : f32
    %8 = vector.broadcast %cst_4 : f32 to vector<5x1x8xf32>
    %9 = arith.divf %7, %8 : vector<5x1x8xf32>
    %10 = arith.mulf %4, %4 : vector<5x1x8xf32>
    %11 = arith.subf %9, %10 : vector<5x1x8xf32>
    %12 = vector.broadcast %4 : vector<5x1x8xf32> to vector<5x16x8xf32>
    %13 = arith.subf %0, %12 : vector<5x16x8xf32>
    %cst_5 = arith.constant 9.99999997E-7 : f32
    %14 = vector.broadcast %cst_5 : f32 to vector<5x1x8xf32>
    %15 = arith.addf %11, %14 : vector<5x1x8xf32>
    %16 = math.rsqrt %15 : vector<5x1x8xf32>
    %17 = vector.broadcast %16 : vector<5x1x8xf32> to vector<5x16x8xf32>
    %18 = arith.mulf %13, %17 : vector<5x16x8xf32>
    %c0_6 = arith.constant 0 : index
    %c0_7 = arith.constant 0 : index
    %c0_8 = arith.constant 0 : index
    %19 = vector.load %arg5[%c0_6, %c0_7, %c0_8] : memref<5x1x8xf32, #tpu.memory_space<vmem>>, vector<5x1x8xf32>
    %20 = vector.broadcast %19 : vector<5x1x8xf32> to vector<5x16x8xf32>
    %21 = arith.mulf %18, %20 : vector<5x16x8xf32>
    %c0_9 = arith.constant 0 : index
    %c0_10 = arith.constant 0 : index
    %c0_11 = arith.constant 0 : index
    %22 = vector.load %arg9[%c0_9, %c0_10, %c0_11] : memref<5x1x8xf32, #tpu.memory_space<vmem>>, vector<5x1x8xf32>
    %23 = vector.broadcast %22 : vector<5x1x8xf32> to vector<5x16x8xf32>
    %24 = arith.addf %21, %23 : vector<5x16x8xf32>
    %c0_12 = arith.constant 0 : index
    %c0_13 = arith.constant 0 : index
    %c0_14 = arith.constant 0 : index
    %25 = vector.load %arg2[%c0_12, %c0_13, %c0_14] : memref<5x8x16xf32, #tpu.memory_space<vmem>>, vector<5x8x16xf32>
    "tpu.trace_start"() <{level = 10 : i32, message = "tbi,tio->tbo"}> : () -> ()
    %cst_15 = arith.constant dense<0.000000e+00> : vector<5x16x16xf32>
    %26 = tpu.matmul %24, %25, %cst_15 {dimension_numbers = #tpu.dot_dimension_numbers<[2], [1], [1], [2], [0, 0, 0, 1, 1, 2], [0], [0]>} : vector<5x16x8xf32>, vector<5x8x16xf32>, vector<5x16x16xf32> -> vector<5x16x16xf32>
    "tpu.trace_stop"() : () -> ()
    %cst_16 = arith.constant dense<0.000000e+00> : vector<5x16xf32>
    %27 = vector.multi_reduction <add>, %26, %cst_16 [1] : vector<5x16x16xf32> to vector<5x16xf32>
    %28 = vector.shape_cast %27 : vector<5x16xf32> to vector<5x1x16xf32>
    %cst_17 = arith.constant 1.600000e+01 : f32
    %29 = vector.broadcast %cst_17 : f32 to vector<5x1x16xf32>
    %30 = arith.divf %28, %29 : vector<5x1x16xf32>
    %31 = arith.mulf %26, %26 : vector<5x16x16xf32>
    %cst_18 = arith.constant dense<0.000000e+00> : vector<5x16xf32>
    %32 = vector.multi_reduction <add>, %31, %cst_18 [1] : vector<5x16x16xf32> to vector<5x16xf32>
    %33 = vector.shape_cast %32 : vector<5x16xf32> to vector<5x1x16xf32>
    %cst_19 = arith.constant 1.600000e+01 : f32
    %34 = vector.broadcast %cst_19 : f32 to vector<5x1x16xf32>
    %35 = arith.divf %33, %34 : vector<5x1x16xf32>
    %36 = arith.mulf %30, %30 : vector<5x1x16xf32>
    %37 = arith.subf %35, %36 : vector<5x1x16xf32>
    %38 = vector.broadcast %30 : vector<5x1x16xf32> to vector<5x16x16xf32>
    %39 = arith.subf %26, %38 : vector<5x16x16xf32>
    %cst_20 = arith.constant 9.99999997E-7 : f32
    %40 = vector.broadcast %cst_20 : f32 to vector<5x1x16xf32>
    %41 = arith.addf %37, %40 : vector<5x1x16xf32>
    %42 = math.rsqrt %41 : vector<5x1x16xf32>
    %43 = vector.broadcast %42 : vector<5x1x16xf32> to vector<5x16x16xf32>
    %44 = arith.mulf %39, %43 : vector<5x16x16xf32>
    %c0_21 = arith.constant 0 : index
    %c0_22 = arith.constant 0 : index
    %c0_23 = arith.constant 0 : index
    %45 = vector.load %arg6[%c0_21, %c0_22, %c0_23] : memref<5x1x16xf32, #tpu.memory_space<vmem>>, vector<5x1x16xf32>
    %46 = vector.broadcast %45 : vector<5x1x16xf32> to vector<5x16x16xf32>
    %47 = arith.mulf %44, %46 : vector<5x16x16xf32>
    %c0_24 = arith.constant 0 : index
    %c0_25 = arith.constant 0 : index
    %c0_26 = arith.constant 0 : index
    %48 = vector.load %arg10[%c0_24, %c0_25, %c0_26] : memref<5x1x16xf32, #tpu.memory_space<vmem>>, vector<5x1x16xf32>
    %49 = vector.broadcast %48 : vector<5x1x16xf32> to vector<5x16x16xf32>
    %50 = arith.addf %47, %49 : vector<5x16x16xf32>
    %cst_27 = arith.constant 0.000000e+00 : f32
    %51 = vector.broadcast %cst_27 : f32 to vector<5x16x16xf32>
    %52 = arith.maximumf %50, %51 : vector<5x16x16xf32>
    %c0_28 = arith.constant 0 : index
    %c0_29 = arith.constant 0 : index
    %c0_30 = arith.constant 0 : index
    %53 = vector.load %arg3[%c0_28, %c0_29, %c0_30] : memref<5x16x16xf32, #tpu.memory_space<vmem>>, vector<5x16x16xf32>
    "tpu.trace_start"() <{level = 10 : i32, message = "tbi,tio->tbo"}> : () -> ()
    %cst_31 = arith.constant dense<0.000000e+00> : vector<5x16x16xf32>
    %54 = tpu.matmul %52, %53, %cst_31 {dimension_numbers = #tpu.dot_dimension_numbers<[2], [1], [1], [2], [0, 0, 0, 1, 1, 2], [0], [0]>} : vector<5x16x16xf32>, vector<5x16x16xf32>, vector<5x16x16xf32> -> vector<5x16x16xf32>
    "tpu.trace_stop"() : () -> ()
    %cst_32 = arith.constant dense<0.000000e+00> : vector<5x16xf32>
    %55 = vector.multi_reduction <add>, %54, %cst_32 [1] : vector<5x16x16xf32> to vector<5x16xf32>
    %56 = vector.shape_cast %55 : vector<5x16xf32> to vector<5x1x16xf32>
    %cst_33 = arith.constant 1.600000e+01 : f32
    %57 = vector.broadcast %cst_33 : f32 to vector<5x1x16xf32>
    %58 = arith.divf %56, %57 : vector<5x1x16xf32>
    %59 = arith.mulf %54, %54 : vector<5x16x16xf32>
    %cst_34 = arith.constant dense<0.000000e+00> : vector<5x16xf32>
    %60 = vector.multi_reduction <add>, %59, %cst_34 [1] : vector<5x16x16xf32> to vector<5x16xf32>
    %61 = vector.shape_cast %60 : vector<5x16xf32> to vector<5x1x16xf32>
    %cst_35 = arith.constant 1.600000e+01 : f32
    %62 = vector.broadcast %cst_35 : f32 to vector<5x1x16xf32>
    %63 = arith.divf %61, %62 : vector<5x1x16xf32>
    %64 = arith.mulf %58, %58 : vector<5x1x16xf32>
    %65 = arith.subf %63, %64 : vector<5x1x16xf32>
    %66 = vector.broadcast %58 : vector<5x1x16xf32> to vector<5x16x16xf32>
    %67 = arith.subf %54, %66 : vector<5x16x16xf32>
    %cst_36 = arith.constant 9.99999997E-7 : f32
    %68 = vector.broadcast %cst_36 : f32 to vector<5x1x16xf32>
    %69 = arith.addf %65, %68 : vector<5x1x16xf32>
    %70 = math.rsqrt %69 : vector<5x1x16xf32>
    %71 = vector.broadcast %70 : vector<5x1x16xf32> to vector<5x16x16xf32>
    %72 = arith.mulf %67, %71 : vector<5x16x16xf32>
    %c0_37 = arith.constant 0 : index
    %c0_38 = arith.constant 0 : index
    %c0_39 = arith.constant 0 : index
    %73 = vector.load %arg7[%c0_37, %c0_38, %c0_39] : memref<5x1x16xf32, #tpu.memory_space<vmem>>, vector<5x1x16xf32>
    %74 = vector.broadcast %73 : vector<5x1x16xf32> to vector<5x16x16xf32>
    %75 = arith.mulf %72, %74 : vector<5x16x16xf32>
    %c0_40 = arith.constant 0 : index
    %c0_41 = arith.constant 0 : index
    %c0_42 = arith.constant 0 : index
    %76 = vector.load %arg11[%c0_40, %c0_41, %c0_42] : memref<5x1x16xf32, #tpu.memory_space<vmem>>, vector<5x1x16xf32>
    %77 = vector.broadcast %76 : vector<5x1x16xf32> to vector<5x16x16xf32>
    %78 = arith.addf %75, %77 : vector<5x16x16xf32>
    %cst_43 = arith.constant 0.000000e+00 : f32
    %79 = vector.broadcast %cst_43 : f32 to vector<5x16x16xf32>
    %80 = arith.maximumf %78, %79 : vector<5x16x16xf32>
    %c0_44 = arith.constant 0 : index
    %c0_45 = arith.constant 0 : index
    %c0_46 = arith.constant 0 : index
    %81 = vector.load %arg4[%c0_44, %c0_45, %c0_46] : memref<5x16x8xf32, #tpu.memory_space<vmem>>, vector<5x16x8xf32>
    "tpu.trace_start"() <{level = 10 : i32, message = "tbi,tio->tbo"}> : () -> ()
    %cst_47 = arith.constant dense<0.000000e+00> : vector<5x16x8xf32>
    %82 = tpu.matmul %80, %81, %cst_47 {dimension_numbers = #tpu.dot_dimension_numbers<[2], [1], [1], [2], [0, 0, 0, 1, 1, 2], [0], [0]>} : vector<5x16x16xf32>, vector<5x16x8xf32>, vector<5x16x8xf32> -> vector<5x16x8xf32>
    "tpu.trace_stop"() : () -> ()
    %cst_48 = arith.constant dense<0.000000e+00> : vector<5x8xf32>
    %83 = vector.multi_reduction <add>, %82, %cst_48 [1] : vector<5x16x8xf32> to vector<5x8xf32>
    %84 = vector.shape_cast %83 : vector<5x8xf32> to vector<5x1x8xf32>
    %cst_49 = arith.constant 1.600000e+01 : f32
    %85 = vector.broadcast %cst_49 : f32 to vector<5x1x8xf32>
    %86 = arith.divf %84, %85 : vector<5x1x8xf32>
    %87 = arith.mulf %82, %82 : vector<5x16x8xf32>
    %cst_50 = arith.constant dense<0.000000e+00> : vector<5x8xf32>
    %88 = vector.multi_reduction <add>, %87, %cst_50 [1] : vector<5x16x8xf32> to vector<5x8xf32>
    %89 = vector.shape_cast %88 : vector<5x8xf32> to vector<5x1x8xf32>
    %cst_51 = arith.constant 1.600000e+01 : f32
    %90 = vector.broadcast %cst_51 : f32 to vector<5x1x8xf32>
    %91 = arith.divf %89, %90 : vector<5x1x8xf32>
    %92 = arith.mulf %86, %86 : vector<5x1x8xf32>
    %93 = arith.subf %91, %92 : vector<5x1x8xf32>
    %94 = vector.broadcast %86 : vector<5x1x8xf32> to vector<5x16x8xf32>
    %95 = arith.subf %82, %94 : vector<5x16x8xf32>
    %cst_52 = arith.constant 9.99999997E-7 : f32
    %96 = vector.broadcast %cst_52 : f32 to vector<5x1x8xf32>
    %97 = arith.addf %93, %96 : vector<5x1x8xf32>
    %98 = math.rsqrt %97 : vector<5x1x8xf32>
    %99 = vector.broadcast %98 : vector<5x1x8xf32> to vector<5x16x8xf32>
    %100 = arith.mulf %95, %99 : vector<5x16x8xf32>
    %c0_53 = arith.constant 0 : index
    %c0_54 = arith.constant 0 : index
    %c0_55 = arith.constant 0 : index
    %101 = vector.load %arg8[%c0_53, %c0_54, %c0_55] : memref<5x1x8xf32, #tpu.memory_space<vmem>>, vector<5x1x8xf32>
    %102 = vector.broadcast %101 : vector<5x1x8xf32> to vector<5x16x8xf32>
    %103 = arith.mulf %100, %102 : vector<5x16x8xf32>
    %c0_56 = arith.constant 0 : index
    %c0_57 = arith.constant 0 : index
    %c0_58 = arith.constant 0 : index
    %104 = vector.load %arg12[%c0_56, %c0_57, %c0_58] : memref<5x1x8xf32, #tpu.memory_space<vmem>>, vector<5x1x8xf32>
    %105 = vector.broadcast %104 : vector<5x1x8xf32> to vector<5x16x8xf32>
    %106 = arith.addf %103, %105 : vector<5x16x8xf32>
    %cst_59 = arith.constant 1.250000e-01 : f32
    %107 = vector.broadcast %cst_59 : f32 to vector<5x16x8xf32>
    %108 = arith.mulf %106, %107 : vector<5x16x8xf32>
    %c0_60 = arith.constant 0 : index
    %c0_61 = arith.constant 0 : index
    %c0_62 = arith.constant 0 : index
    %109 = vector.load %arg1[%c0_60, %c0_61, %c0_62] : memref<5x16x8xf32, #tpu.memory_space<vmem>>, vector<5x16x8xf32>
    %cst_63 = arith.constant dense<0.000000e+00> : vector<5x8xf32>
    %110 = vector.multi_reduction <add>, %109, %cst_63 [1] : vector<5x16x8xf32> to vector<5x8xf32>
    %111 = vector.shape_cast %110 : vector<5x8xf32> to vector<5x1x8xf32>
    %c0_64 = arith.constant 0 : index
    %c0_65 = arith.constant 0 : index
    %112 = vector.load %arg14[%c0_64, %c0_65] : memref<1x8xf32, #tpu.memory_space<vmem>>, vector<1x8xf32>
    %113 = arith.mulf %112, %112 : vector<1x8xf32>
    %cst_66 = arith.constant dense<0.000000e+00> : vector<1xf32>
    %114 = vector.multi_reduction <add>, %113, %cst_66 [1] : vector<1x8xf32> to vector<1xf32>
    %115 = vector.shape_cast %114 : vector<1xf32> to vector<1x1xf32>
    %cst_67 = arith.constant -1.000000e+00 : f32
    %116 = vector.broadcast %cst_67 : f32 to vector<1x1xf32>
    %117 = arith.mulf %116, %115 : vector<1x1xf32>
    %118 = vector.extract_strided_slice %111 {offsets = [0, 0, 0], sizes = [1, 1, 8], strides = [1, 1, 1]} : vector<5x1x8xf32> to vector<1x1x8xf32>
    %119 = vector.shape_cast %118 : vector<1x1x8xf32> to vector<1x8xf32>
    %120 = arith.mulf %112, %119 : vector<1x8xf32>
    %cst_68 = arith.constant dense<0.000000e+00> : vector<1xf32>
    %121 = vector.multi_reduction <add>, %120, %cst_68 [1] : vector<1x8xf32> to vector<1xf32>
    %122 = vector.shape_cast %121 : vector<1xf32> to vector<1x1xf32>
    %cst_69 = arith.constant 0.166666672 : f32
    %123 = vector.broadcast %cst_69 : f32 to vector<1x1xf32>
    %124 = arith.mulf %123, %117 : vector<1x1xf32>
    %125 = arith.addf %124, %122 : vector<1x1xf32>
    %126 = arith.mulf %108, %108 : vector<5x16x8xf32>
    %cst_70 = arith.constant dense<0.000000e+00> : vector<5x16xf32>
    %127 = vector.multi_reduction <add>, %126, %cst_70 [2] : vector<5x16x8xf32> to vector<5x16xf32>
    %128 = vector.shape_cast %127 : vector<5x16xf32> to vector<5x16x1xf32>
    %cst_71 = arith.constant -1.000000e+00 : f32
    %129 = vector.broadcast %cst_71 : f32 to vector<5x16x1xf32>
    %130 = arith.mulf %129, %128 : vector<5x16x1xf32>
    %cst_72 = arith.constant dense<0.000000e+00> : vector<16x1xf32>
    %131 = vector.multi_reduction <add>, %130, %cst_72 [0] : vector<5x16x1xf32> to vector<16x1xf32>
    %132 = vector.extract_strided_slice %108 {offsets = [0, 0, 0], sizes = [4, 16, 8], strides = [1, 1, 1]} : vector<5x16x8xf32> to vector<4x16x8xf32>
    %133 = vector.extract_strided_slice %111 {offsets = [1, 0, 0], sizes = [4, 1, 8], strides = [1, 1, 1]} : vector<5x1x8xf32> to vector<4x1x8xf32>
    %134 = vector.broadcast %133 : vector<4x1x8xf32> to vector<4x16x8xf32>
    %135 = arith.mulf %132, %134 : vector<4x16x8xf32>
    %cst_73 = arith.constant dense<0.000000e+00> : vector<4x16xf32>
    %136 = vector.multi_reduction <add>, %135, %cst_73 [2] : vector<4x16x8xf32> to vector<4x16xf32>
    %137 = vector.shape_cast %136 : vector<4x16xf32> to vector<4x16x1xf32>
    %cst_74 = arith.constant dense<0.000000e+00> : vector<16x1xf32>
    %138 = vector.multi_reduction <add>, %137, %cst_74 [0] : vector<4x16x1xf32> to vector<16x1xf32>
    %139 = vector.extract_strided_slice %108 {offsets = [4, 0, 0], sizes = [1, 16, 8], strides = [1, 1, 1]} : vector<5x16x8xf32> to vector<1x16x8xf32>
    %140 = vector.shape_cast %139 : vector<1x16x8xf32> to vector<16x8xf32>
    %141 = vector.extract_strided_slice %111 {offsets = [4, 0, 0], sizes = [1, 1, 8], strides = [1, 1, 1]} : vector<5x1x8xf32> to vector<1x1x8xf32>
    %142 = vector.shape_cast %141 : vector<1x1x8xf32> to vector<1x8xf32>
    %143 = vector.broadcast %142 : vector<1x8xf32> to vector<16x8xf32>
    %144 = arith.mulf %140, %143 : vector<16x8xf32>
    %cst_75 = arith.constant dense<0.000000e+00> : vector<16xf32>
    %145 = vector.multi_reduction <add>, %144, %cst_75 [1] : vector<16x8xf32> to vector<16xf32>
    %146 = vector.shape_cast %145 : vector<16xf32> to vector<16x1xf32>
    %c0_76 = arith.constant 0 : index
    %c0_77 = arith.constant 0 : index
    %147 = memref.load %arg13[%c0_76, %c0_77] : memref<1x1xf32, #tpu.memory_space<smem>>
    %148 = vector.broadcast %147 : f32 to vector<1x1xf32>
    %149 = arith.subf %148, %125 : vector<1x1xf32>
    %cst_78 = arith.constant 0.166666672 : f32
    %150 = vector.broadcast %cst_78 : f32 to vector<16x1xf32>
    %151 = arith.mulf %150, %131 : vector<16x1xf32>
    %152 = arith.addf %151, %138 : vector<16x1xf32>
    %153 = arith.addf %152, %146 : vector<16x1xf32>
    %154 = vector.broadcast %149 : vector<1x1xf32> to vector<16x1xf32>
    %155 = arith.subf %154, %153 : vector<16x1xf32>
    %c0_79 = arith.constant 0 : index
    %c0_80 = arith.constant 0 : index
    %156 = vector.load %arg15[%c0_79, %c0_80] : memref<16x1xf32, #tpu.memory_space<vmem>>, vector<16x1xf32>
    tpu.vector_store %arg15[%c0_79, %c0_80], %155 {strides = array<i32>} : memref<16x1xf32, #tpu.memory_space<vmem>>, vector<16x1xf32>,
    return
  }
}

</mosaic_0001>

<bundles_post_ra>
// kernel: tpu_custom_call.1
= control target key start
LH: loop header
LB: loop body
LE: loop exit
PB: predicated region body
PF: predicated region fallthrough
CT: control target
= control target key end

     0   :  { %vm61_vm0 = vcmask 64512   ;;  %vm713_vm1 = vcmask 130048   ;;  %vm2351_vm2 = vcmask 57344   ;;  %vm2481_vm3 = vcmask 7168   ;;  %s3694_s2 = inlined_call_operand.vmem [shape: f32[5,8,16], index: 2, kind: input, shape index: {}]   ;;  %s3695_s0 = inlined_call_operand.vmem [shape: f32[5,16,8], index: 0, kind: input, shape index: {}]   ;;  %s3696_s5 = inlined_call_operand.vmem [shape: f32[5,1,8], index: 5, kind: input, shape index: {}]   ;;  %s3697_s9 = inlined_call_operand.vmem [shape: f32[5,1,8], index: 9, kind: input, shape index: {}]   ;;  %s3698_s3 = inlined_call_operand.vmem [shape: f32[5,16,16], index: 3, kind: input, shape index: {}]   ;;  %s3699_s6 = inlined_call_operand.vmem [shape: f32[5,1,16], index: 6, kind: input, shape index: {}]   ;;  %s3700_s10 = inlined_call_operand.vmem [shape: f32[5,1,16], index: 10, kind: input, shape index: {}]   ;;  %s3701_s4 = inlined_call_operand.vmem [shape: f32[5,16,8], index: 4, kind: input, shape index: {}]   ;;  %s3702_s7 = inlined_call_operand.vmem [shape: f32[5,1,16], index: 7, kind: input, shape index: {}]   ;;  %s3703_s11 = inlined_call_operand.vmem [shape: f32[5,1,16], index: 11, kind: input, shape index: {}]   ;;  %s3704_s1 = inlined_call_operand.vmem [shape: f32[5,16,8], index: 1, kind: input, shape index: {}]   ;;  %s3705_s14 = inlined_call_operand.vmem [shape: f32[1,8], index: 14, kind: input, shape index: {}]   ;;  %s3706_s8 = inlined_call_operand.vmem [shape: f32[5,1,8], index: 8, kind: input, shape index: {}]   ;;  %s3707_s12 = inlined_call_operand.vmem [shape: f32[5,1,8], index: 12, kind: input, shape index: {}]   ;;  %s3708_s13 = inlined_call_operand.<no memory space> [shape: f32[1,1], index: 13, kind: input, shape index: {}]   ;;  %s3709_s15 = inlined_call_operand.vmem [shape: f32[16,1], index: 15, kind: output, shape index: {}]  }
   0x1   :  { %v303_v0 = vld [vmem:[%s3694_s2] sm:$0xff]  ;;  %v304_v1 = vld [vmem:[%s3694_s2 + $0x8] sm:$0xff]  ;;  %v2895_v8 = vld [vmem:[%s3695_s0 + $0x10] sm:$0xff] }
   0x2   :  { %v2877_v2 = vld [vmem:[%s3695_s0] sm:$0xff]  ;;  %2613 = vmatprep.subr.mxu0 %v303_v0  ;;  %2618 = vmatprep.subr.mxu1 %v304_v1  ;;  %v2882_v3 = vld [vmem:[%s3695_s0 + $0x8] sm:$0xff]  ;;  %v2900_v9 = vld [vmem:[%s3695_s0 + $0x18] sm:$0xff]  ;;  %v71_v12 = vsel %vm61_vm0, %v2895_v8, 0.0  ;;  %v115_v17 = vmul.f32 %v2895_v8, %v2895_v8 }
   0x3   :  { %v62_v4 = vsel %vm61_vm0, %v2877_v2, 0.0  ;;  %v113_v5 = vmul.f32 %v2877_v2, %v2877_v2  ;;  %2614 = vmatpush3.msra.mxu0 %v303_v0  ;;  %v63_v6 = vsel %vm61_vm0, %v2882_v3, 0.0  ;;  %v114_v7 = vmul.f32 %v2882_v3, %v2882_v3  ;;  %2619 = vmatpush3.msra.mxu1 %v304_v1  ;;  %v2910_v14 = vld [vmem:[%s3694_s2 + $0x10] sm:$0xff]  ;;  %v2921_v19 = vld [vmem:[%s3694_s2 + $0x18] sm:$0xff]  ;;  %v2926_v20 = vld [vmem:[%s3695_s0 + $0x20] sm:$0xff] }
   0x4   :  { %v64_v10 = vadd.f32 %v63_v6, %v62_v4  ;;  %v72_v13 = vsel %vm61_vm0, %v2900_v9, 0.0  ;;  %v116_v18 = vmul.f32 %v2900_v9, %v2900_v9  ;;  %2623 = vmatprep.subr.mxu0 %v2910_v14  ;;  %v2931_v21 = vld [vmem:[%s3695_s0 + $0x28] sm:$0xff]  ;;  %2628 = vmatprep.subr.mxu1 %v2921_v19  ;;  %v80_v24 = vsel %vm61_vm0, %v2926_v20, 0.0  ;;  %v2941_v26 = vld [vmem:[%s3695_s0 + $0x30] sm:$0xff]  ;;  %v2950_v35 = vld [vmem:[%s3695_s0 + $0x38] sm:$0xff] }
   0x5   :  { %v123_v11 = vsel %vm61_vm0, %v113_v5, 0.0  ;;  %v124_v15 = vsel %vm61_vm0, %v114_v7, 0.0  ;;  %v73_v16 = vadd.f32 %v72_v13, %v71_v12  ;;  %v81_v25 = vsel %vm61_vm0, %v2931_v21, 0.0 }
   0x6   :  { %v65_v22 = vrot.slane %v64_v10, 4  ;;  %v125_v23 = vadd.f32 %v124_v15, %v123_v11  ;;  %v132_v28 = vsel %vm61_vm0, %v115_v17, 0.0  ;;  %v133_v29 = vsel %vm61_vm0, %v116_v18, 0.0 }
   0x7   :  { %v74_v27 = vrot.slane %v73_v16, 4  ;;  %v82_v30 = vadd.f32 %v81_v25, %v80_v24  ;;  %v134_v33 = vadd.f32 %v133_v29, %v132_v28  ;;  %v117_v34 = vmul.f32 %v2926_v20, %v2926_v20  ;;  %v2980_v28 = vld [vmem:[%s3695_s0 + $0x48] sm:$0xff] }
   0x8   :  { %v66_v31 = vadd.f32 %v65_v22, %v64_v10  ;;  %v126_v32 = vrot.slane %v125_v23, 4  ;;  %v118_v38 = vmul.f32 %v2931_v21, %v2931_v21  ;;  %v89_v39 = vsel %vm61_vm0, %v2941_v26, 0.0 }
   0x9   :  { %v75_v36 = vadd.f32 %v74_v27, %v73_v16  ;;  %v83_v37 = vrot.slane %v82_v30, 4  ;;  %v135_v42 = vrot.slane %v134_v33, 4  ;;  %v141_v43 = vsel %vm61_vm0, %v117_v34, 0.0  ;;  %v2975_v27 = vld [vmem:[%s3695_s0 + $0x40] sm:$0xff] }
   0xa   :  { %v67_v40 = vrot.slane %v66_v31, 2  ;;  %v127_v41 = vadd.f32 %v126_v32, %v125_v23  ;;  %v142_v46 = vsel %vm61_vm0, %v118_v38, 0.0  ;;  %v90_v47 = vsel %vm61_vm0, %v2950_v35, 0.0 }
   0xb   :  { %v76_v44 = vrot.slane %v75_v36, 2  ;;  %v84_v45 = vadd.f32 %v83_v37, %v82_v30  ;;  %v136_v50 = vadd.f32 %v135_v42, %v134_v33  ;;  %v143_v51 = vadd.f32 %v142_v46, %v141_v43 }
   0xc   :  { %v68_v48 = vadd.f32 %v67_v40, %v66_v31  ;;  %v128_v49 = vrot.slane %v127_v41, 2  ;;  %v91_v54 = vadd.f32 %v90_v47, %v89_v39  ;;  %v119_v55 = vmul.f32 %v2941_v26, %v2941_v26 }
   0xd   :  { %v77_v52 = vadd.f32 %v76_v44, %v75_v36  ;;  %v85_v53 = vrot.slane %v84_v45, 2  ;;  %v137_v58 = vrot.slane %v136_v50, 2  ;;  %v144_v59 = vrot.slane %v143_v51, 4 }
   0xe   :  { %v69_v56 = vrot.slane %v68_v48, 1  ;;  %v129_v57 = vadd.f32 %v128_v49, %v127_v41  ;;  %v92_v62 = vrot.slane %v91_v54, 4  ;;  %v120_v63 = vmul.f32 %v2950_v35, %v2950_v35 }
   0xf   :  { %v78_v60 = vrot.slane %v77_v52, 1  ;;  %v86_v61 = vadd.f32 %v85_v53, %v84_v45  ;;  %v138_v4 = vadd.f32 %v137_v58, %v136_v50  ;;  %v145_v5 = vadd.f32 %v144_v59, %v143_v51 }
  0x10   :  { %v70_v0 = vadd.f32 %v69_v56, %v68_v48  ;;  %v130_v1 = vrot.slane %v129_v57, 1  ;;  %v93_v10 = vadd.f32 %v92_v62, %v91_v54  ;;  %v150_v24 = vsel %vm61_vm0, %v119_v55, 0.0 }
  0x11   :  { %v79_v6 = vadd.f32 %v78_v60, %v77_v52  ;;  %v87_v7 = vrot.slane %v86_v61, 1  ;;  %v139_v13 = vrot.slane %v138_v4, 1  ;;  %v146_v15 = vrot.slane %v145_v5, 2 }
  0x12   :  { %v2964_v11 = vmul.f32 0.0625, %v70_v0  ;;  %v131_v12 = vadd.f32 %v130_v1, %v129_v57  ;;  %v94_v18 = vrot.slane %v93_v10, 2  ;;  %v151_v25 = vsel %vm61_vm0, %v120_v63, 0.0 }
  0x13   :  { %v2966_v16 = vmul.f32 0.0625, %v79_v6  ;;  %v88_v17 = vadd.f32 %v87_v7, %v86_v61  ;;  %v140_v29 = vadd.f32 %v139_v13, %v138_v4  ;;  %v147_v33 = vadd.f32 %v146_v15, %v145_v5 }
  0x14   :  { %v168_v22 = vmul.f32 0.0625, %v131_v12  ;;  %v173_v23 = vmul.f32 %v2964_v11, %v2964_v11  ;;  %v95_v34 = vadd.f32 %v94_v18, %v93_v10  ;;  %v152_v37 = vadd.f32 %v151_v25, %v150_v24  ;;  %v2493_v25 = vld [vmem:[%s3697_s9] ss:$0 sm:$0xff] }
  0x15   :  { %v174_v30 = vmul.f32 %v2966_v16, %v2966_v16  ;;  %v2984_v32 = vmul.f32 0.0625, %v88_v17  ;;  %v169_v36 = vmul.f32 0.0625, %v140_v29  ;;  %v98_v38 = vsel %vm61_vm0, %v2975_v27, 0.0  ;;  %v2488_v17 = vld [vmem:[%s3696_s5] ss:$0 sm:$0xff] }
  0x16   :  { %v178_v31 = vsub.f32 %v168_v22, %v173_v23  ;;  %v99_v39 = vsel %vm61_vm0, %v2980_v28, 0.0  ;;  %v148_v41 = vrot.slane %v147_v33, 1  ;;  %v96_v44 = vrot.slane %v95_v34, 1 }
  0x17   :  { %v179_v42 = vsub.f32 %v169_v36, %v174_v30  ;;  %v175_v43 = vmul.f32 %v2984_v32, %v2984_v32  ;;  %v153_v45 = vrot.slane %v152_v37, 4  ;;  %v100_v47 = vadd.f32 %v99_v39, %v98_v38 }
  0x18   :  { %v193_v40 = vadd.f32 1e-06, %v178_v31  ;;  %v149_v46 = vadd.f32 %v148_v41, %v147_v33  ;;  %v121_v48 = vmul.f32 %v2975_v27, %v2975_v27  ;;  %v97_v50 = vadd.f32 %v96_v44, %v95_v34 }
  0x19   :  { %v194_v49 = vadd.f32 1e-06, %v179_v42  ;;  %v154_v51 = vadd.f32 %v153_v45, %v152_v37  ;;  %v122_v52 = vmul.f32 %v2980_v28, %v2980_v28  ;;  %v101_v54 = vrot.slane %v100_v47, 4  ;;  %v2494_v42 = vld [vmem:[%s3697_s9 + $0x1] ss:$0 sm:$0xff] }
  0x1a   :  { %2748 = vrsqrt.f32 %v193_v40  ;;  %v170_v53 = vmul.f32 0.0625, %v149_v46  ;;  %v159_v55 = vsel %vm61_vm0, %v121_v48, 0.0  ;;  %v2998_v61 = vmul.f32 0.0625, %v97_v50 }
  0x1b   :  { %2750 = vrsqrt.f32 %v194_v49  ;;  %v155_v56 = vrot.slane %v154_v51, 2  ;;  %v160_v57 = vsel %vm61_vm0, %v122_v52, 0.0  ;;  %v102_v59 = vadd.f32 %v101_v54, %v100_v47  ;;  %v2495_v54 = vld [vmem:[%s3697_s9 + $0x2] ss:$0 sm:$0xff] }
  0x1c   :  { %v180_v58 = vsub.f32 %v170_v53, %v175_v43  ;;  %v161_v60 = vadd.f32 %v160_v57, %v159_v55  ;;  %v183_v4 = vsub.f32 %v2877_v2, %v2964_v11  ;;  %v184_v5 = vsub.f32 %v2882_v3, %v2964_v11 }
  0x1d   :  { %v156_v62 = vadd.f32 %v155_v56, %v154_v51  ;;  %v103_v0 = vrot.slane %v102_v59, 2  ;;  %v176_v13 = vmul.f32 %v2998_v61, %v2998_v61  ;;  %v185_v18 = vsub.f32 %v2895_v8, %v2966_v16  ;;  %v2489_v8 = vld [vmem:[%s3696_s5 + $0x1] ss:$0 sm:$0xff] }
  0x1e   :  { %v195_v63 = vadd.f32 1e-06, %v180_v58  ;;  %v162_v1 = vrot.slane %v161_v60, 4  ;;  %v186_v2 = vsub.f32 %v2900_v9, %v2966_v16  ;;  %v187_v9 = vsub.f32 %v2926_v20, %v2984_v32  ;;  %v307_v20 = vld [vmem:[%s3694_s2 + $0x20] sm:$0xff] }
  0x1f   :  { %v157_v6 = vrot.slane %v156_v62, 1  ;;  %v104_v7 = vadd.f32 %v103_v0, %v102_v59  ;;  %v188_v43 = vsub.f32 %v2931_v21, %v2984_v32  ;;  %v2490_v21 = vld [vmem:[%s3696_s5 + $0x2] ss:$0 sm:$0xff]  ;;  %v2491_v0 = vld [vmem:[%s3696_s5 + $0x3] ss:$0 sm:$0xff] }
  0x20   :  { %2752 = vrsqrt.f32 %v195_v63  ;;  %v163_v10 = vadd.f32 %v162_v1, %v161_v60 }
  0x21   :  { %v158_v12 = vadd.f32 %v157_v6, %v156_v62  ;;  %v105_v3 = vrot.slane %v104_v7, 1  ;;  %v190_v62 = vsub.f32 %v2950_v35, %v2998_v61 }
  0x22   :  { %v164_v11 = vrot.slane %v163_v10, 2 }
  0x23   :  { %v171_v24 = vmul.f32 0.0625, %v158_v12  ;;  %v106_v29 = vadd.f32 %v105_v3, %v104_v7  ;;  %v2492_v12 = vld [vmem:[%s3696_s5 + $0x4] ss:$0 sm:$0xff] }
  0x24   :  { %v2749_v15 = vpop.eup %2748  ;;  %v165_v30 = vadd.f32 %v164_v11, %v163_v10  ;;  %v964_v3 = vld [vmem:[%s3698_s3] sm:$0xff]  ;;  %v965_v11 = vld [vmem:[%s3698_s3 + $0x8] sm:$0xff] }
  0x25   :  { %v203_v22 = vmul.f32 %v2749_v15, %v183_v4  ;;  %v204_v23 = vmul.f32 %v2749_v15, %v184_v5  ;;  %v2751_v31 = vpop.eup %2750  ;;  %v181_v16 = vsub.f32 %v171_v24, %v176_v13  ;;  %v112_v38 = vmul.f32 0.0625, %v106_v29  ;;  %v967_v24 = vld [vmem:[%s3698_s3 + $0x18] sm:$0xff]  ;;  %v968_v29 = vld [vmem:[%s3698_s3 + $0x20] sm:$0xff] }
  0x26   :  { %v205_v36 = vmul.f32 %v2751_v31, %v185_v18  ;;  %v206_v37 = vmul.f32 %v2751_v31, %v186_v2  ;;  %v166_v39 = vrot.slane %v165_v30, 1  ;;  %v970_v31 = vld [vmem:[%s3698_s3 + $0x30] sm:$0xff] }
  0x27   :  { %v248_v33 = vmul.f32 %v2488_v17, %v203_v22  ;;  %v249_v34 = vmul.f32 %v2488_v17, %v204_v23  ;;  %v196_v44 = vadd.f32 1e-06, %v181_v16  ;;  %v177_v48 = vmul.f32 %v112_v38, %v112_v38  ;;  %v2497_v17 = vld [vmem:[%s3697_s9 + $0x4] ss:$0 sm:$0xff]  ;;  %v966_v22 = vld [vmem:[%s3698_s3 + $0x10] sm:$0xff] }
  0x28   :  { %v250_v45 = vmul.f32 %v2489_v8, %v205_v36  ;;  %v251_v46 = vmul.f32 %v2489_v8, %v206_v37  ;;  %v167_v47 = vadd.f32 %v166_v39, %v165_v30  ;;  %v191_v35 = vsub.f32 %v2975_v27, %v112_v38  ;;  %v969_v30 = vld [vmem:[%s3698_s3 + $0x28] sm:$0xff] }
  0x29   :  { %v293_v40 = vadd.f32 %v2493_v25, %v248_v33  ;;  %v294_v41 = vadd.f32 %v2493_v25, %v249_v34  ;;  %2754 = vrsqrt.f32 %v196_v44  ;;  %v2708_v23 = vpack.c.bf16 %v965_v11, %v964_v3  ;;  %v971_v34 = vld [vmem:[%s3698_s3 + $0x38] sm:$0xff] }
  0x2a   :  { %v2753_v49 = vpop.eup %2752  ;;  %v295_v50 = vadd.f32 %v2494_v42, %v250_v45  ;;  %v296_v51 = vadd.f32 %v2494_v42, %v251_v46  ;;  %v172_v32 = vmul.f32 0.0625, %v167_v47  ;;  %v2712_v25 = vpack.c.bf16 %v967_v24, %v966_v22 }
  0x2b   :  { %2615 = vmatprep.mubr.msk.f32.mxu0 %vm61_vm0, %v293_v40  ;;  %v207_v52 = vmul.f32 %v2753_v49, %v187_v9  ;;  %v208_v53 = vmul.f32 %v2753_v49, %v188_v43  ;;  %v3086_v33 = vpack.c.bf16 %v969_v30, %v968_v29  ;;  %v3091_v8 = vpack.c.bf16 %v971_v34, %v970_v31 }
  0x2c   :  { %2616 = vmatmul.mubr.msk.f32.vlgmr.msra.gmra.mrb[0].mxu0 %vm61_vm0, %v294_v41  ;;  %2620 = vmatprep.mubr.msk.f32.mxu1 %vm61_vm0, %v295_v50  ;;  %v182_v55 = vsub.f32 %v172_v32, %v177_v48 }
  0x2d   :  { %2624 = vmatpush3.msra.mxu0 %v2910_v14  ;;  %2621 = vmatmul.mubr.msk.f32.vlgmr.msra.gmra.mrb[0].mxu1 %vm61_vm0, %v296_v51  ;;  %v252_v56 = vmul.f32 %v2490_v21, %v207_v52  ;;  %v253_v57 = vmul.f32 %v2490_v21, %v208_v53  ;;  %v189_v14 = vsub.f32 %v2941_v26, %v2998_v61  ;;  %v2496_v26 = vld [vmem:[%s3697_s9 + $0x3] ss:$0 sm:$0xff] }
  0x2e   :  { %2633 = vmatprep.subr.mxu0 %v307_v20  ;;  %2629 = vmatpush3.msra.mxu1 %v2921_v19  ;;  %v197_v58 = vadd.f32 1e-06, %v182_v55  ;;  %v192_v61 = vsub.f32 %v2980_v28, %v112_v38 }
  0x2f   :  { %v297_v59 = vadd.f32 %v2495_v54, %v252_v56  ;;  %v298_v60 = vadd.f32 %v2495_v54, %v253_v57  ;;  %2709 = vmatprep.subr.bf16.mxu1 %v2708_v23 }
  0x30   :  { %2756 = vrsqrt.f32 %v197_v58 }
  0x31   :  { %2625 = vmatprep.mubr.msk.f32.mxu0 %vm61_vm0, %v297_v59 }
  0x32   :  { %2626 = vmatmul.mubr.msk.f32.vlgmr.msra.gmra.mrb[2].mxu0 %vm61_vm0, %v298_v60 }
  0x33   :  { %v2755_v63 = vpop.eup %2754  ;;  %2634 = vmatpush3.msra.mxu0 %v307_v20 }
  0x34   :  { %v209_v19 = vmul.f32 %v2755_v63, %v189_v14  ;;  %v210_v1 = vmul.f32 %v2755_v63, %v190_v62  ;;  %2713 = vmatprep.subr.bf16.mxu0 %v2712_v25 }
  0x36   :  { %v254_v4 = vmul.f32 %v2491_v0, %v209_v19  ;;  %v255_v5 = vmul.f32 %v2491_v0, %v210_v1 }
  0x38   :  { %v299_v6 = vadd.f32 %v2496_v26, %v254_v4  ;;  %v300_v7 = vadd.f32 %v2496_v26, %v255_v5 }
  0x3a   :  { %v2757_v10 = vpop.eup %2756  ;;  %2630 = vmatprep.mubr.msk.f32.mxu1 %vm61_vm0, %v299_v6 }
  0x3b   :  { %2631 = vmatmul.mubr.msk.f32.vlgmr.msra.gmra.mrb[2].mxu1 %vm61_vm0, %v300_v7  ;;  %v211_v13 = vmul.f32 %v2757_v10, %v191_v35  ;;  %v212_v15 = vmul.f32 %v2757_v10, %v192_v61 }
  0x3c   :  { %2711 = vmatpush3.bf16.msra.mxu1 %v2708_v23 }
  0x3d   :  { %v256_v27 = vmul.f32 %v2492_v12, %v211_v13  ;;  %v257_v18 = vmul.f32 %v2492_v12, %v212_v15  ;;  %2717 = vmatprep.subr.bf16.mxu1 %v3086_v33 }
  0x3f   :  { %v301_v28 = vadd.f32 %v2497_v17, %v256_v27  ;;  %v302_v2 = vadd.f32 %v2497_v17, %v257_v18 }
  0x41   :  { %2635 = vmatprep.mubr.msk.f32.mxu0 %vm61_vm0, %v301_v28 }
  0x42   :  { %2636 = vmatmul.mubr.msk.f32.vlgmr.msra.gmra.mrb[4].mxu0 %vm61_vm0, %v302_v2 }
  0x43   :  { %2715 = vmatpush3.bf16.msra.mxu0 %v2712_v25 }
  0x44   :  { %2721 = vmatprep.subr.bf16.mxu0 %v3091_v8 }
  0xff   :  { %v3095_v9 = vpop.f32.mrb[0].mxu0 }
 0x100   :  { %v715_v16 = vsel %vm713_vm1, %v3095_v9, 0.0  ;;  %v765_v36 = vmul.f32 %v3095_v9, %v3095_v9  ;;  %v3101_v37 = vpop.f32.mrb[1].mxu0  ;;  %v3108_v41 = vpop.f32.mrb[0].mxu1 }
 0x101   :  { %v714_v38 = vsel %vm713_vm1, %v3101_v37, 0.0  ;;  %v764_v39 = vmul.f32 %v3101_v37, %v3101_v37  ;;  %v724_v43 = vsel %vm713_vm1, %v3108_v41, 0.0  ;;  %v767_v44 = vmul.f32 %v3108_v41, %v3108_v41  ;;  %v3115_v46 = vpop.f32.mrb[1].mxu1 }
 0x102   :  { %v775_v40 = vsel %vm713_vm1, %v765_v36, 0.0  ;;  %v716_v42 = vadd.f32 %v715_v16, %v714_v38  ;;  %v723_v20 = vsel %vm713_vm1, %v3115_v46, 0.0  ;;  %v766_v49 = vmul.f32 %v3115_v46, %v3115_v46 }
 0x103   :  { %v774_v45 = vsel %vm713_vm1, %v764_v39, 0.0  ;;  %v784_v50 = vsel %vm713_vm1, %v767_v44, 0.0  ;;  %v725_v51 = vadd.f32 %v724_v43, %v723_v20 }
 0x104   :  { %v717_v47 = vrot.slane %v716_v42, 4  ;;  %v776_v48 = vadd.f32 %v775_v40, %v774_v45  ;;  %v783_v52 = vsel %vm713_vm1, %v766_v49, 0.0 }
 0x105   :  { %v726_v53 = vrot.slane %v725_v51, 4  ;;  %v785_v54 = vadd.f32 %v784_v50, %v783_v52  ;;  %v3123_v55 = vpop.f32.mrb[2].mxu0 }
 0x106   :  { %v718_v21 = vadd.f32 %v717_v47, %v716_v42  ;;  %v777_v32 = vrot.slane %v776_v48, 4  ;;  %v733_v58 = vsel %vm713_vm1, %v3123_v55, 0.0  ;;  %v769_v59 = vmul.f32 %v3123_v55, %v3123_v55  ;;  %v3129_v60 = vpop.f32.mrb[3].mxu0 }
 0x107   :  { %v727_v14 = vadd.f32 %v726_v53, %v725_v51  ;;  %v786_v62 = vrot.slane %v785_v54, 4  ;;  %v732_v63 = vsel %vm713_vm1, %v3129_v60, 0.0  ;;  %v768_v0 = vmul.f32 %v3129_v60, %v3129_v60 }
 0x108   :  { %v719_v56 = vrot.slane %v718_v21, 2  ;;  %v778_v57 = vadd.f32 %v777_v32, %v776_v48  ;;  %v793_v26 = vsel %vm713_vm1, %v769_v59, 0.0  ;;  %v734_v4 = vadd.f32 %v733_v58, %v732_v63 }
 0x109   :  { %v728_v5 = vrot.slane %v727_v14, 2  ;;  %v787_v35 = vadd.f32 %v786_v62, %v785_v54  ;;  %v792_v61 = vsel %vm713_vm1, %v768_v0, 0.0 }
 0x10a   :  { %v720_v19 = vadd.f32 %v719_v56, %v718_v21  ;;  %v779_v1 = vrot.slane %v778_v57, 2  ;;  %v735_v10 = vrot.slane %v734_v4, 4  ;;  %v794_v12 = vadd.f32 %v793_v26, %v792_v61 }
 0x10b   :  { %v729_v13 = vadd.f32 %v728_v5, %v727_v14  ;;  %v788_v15 = vrot.slane %v787_v35, 2 }
 0x10c   :  { %v721_v6 = vrot.slane %v720_v19, 1  ;;  %v780_v7 = vadd.f32 %v779_v1, %v778_v57  ;;  %v736_v18 = vadd.f32 %v735_v10, %v734_v4  ;;  %v795_v28 = vrot.slane %v794_v12, 4 }
 0x10d   :  { %v730_v2 = vrot.slane %v729_v13, 1  ;;  %v789_v3 = vadd.f32 %v788_v15, %v787_v35 }
 0x10e   :  { %v722_v17 = vadd.f32 %v721_v6, %v720_v19  ;;  %v781_v27 = vrot.slane %v780_v7, 1  ;;  %v3139_v23 = vpop.f32.mrb[2].mxu1  ;;  %v737_v24 = vrot.slane %v736_v18, 2  ;;  %v796_v25 = vadd.f32 %v795_v28, %v794_v12 }
 0x10f   :  { %v731_v29 = vadd.f32 %v730_v2, %v729_v13  ;;  %v790_v30 = vrot.slane %v789_v3, 1  ;;  %v742_v31 = vsel %vm713_vm1, %v3139_v23, 0.0  ;;  %v771_v34 = vmul.f32 %v3139_v23, %v3139_v23  ;;  %v3145_v16 = vpop.f32.mrb[3].mxu1 }
 0x110   :  { %v3137_v11 = vmul.f32 0.0625, %v722_v17  ;;  %v782_v22 = vadd.f32 %v781_v27, %v780_v7  ;;  %v738_v45 = vadd.f32 %v737_v24, %v736_v18  ;;  %v797_v48 = vrot.slane %v796_v25, 2 }
 0x111   :  { %v3153_v42 = vmul.f32 0.0625, %v731_v29  ;;  %v791_v43 = vadd.f32 %v790_v30, %v789_v3  ;;  %v802_v44 = vsel %vm713_vm1, %v771_v34, 0.0  ;;  %v741_v20 = vsel %vm713_vm1, %v3145_v16, 0.0  ;;  %v2508_v34 = vld [vmem:[%s3699_s6] ss:$0 sm:$0xff] }
 0x112   :  { %v819_v36 = vmul.f32 0.0625, %v782_v22  ;;  %v824_v38 = vmul.f32 %v3137_v11, %v3137_v11  ;;  %v834_v39 = vsub.f32 %v3101_v37, %v3137_v11  ;;  %v835_v40 = vsub.f32 %v3095_v9, %v3137_v11 }
 0x113   :  { %v770_v49 = vmul.f32 %v3145_v16, %v3145_v16  ;;  %v820_v50 = vmul.f32 0.0625, %v791_v43  ;;  %v825_v37 = vmul.f32 %v3153_v42, %v3153_v42  ;;  %v836_v9 = vsub.f32 %v3115_v46, %v3153_v42 }
 0x114   :  { %v829_v47 = vsub.f32 %v819_v36, %v824_v38  ;;  %v837_v51 = vsub.f32 %v3108_v41, %v3153_v42  ;;  %v739_v32 = vrot.slane %v738_v45, 1  ;;  %v798_v52 = vadd.f32 %v797_v48, %v796_v25 }
 0x115   :  { %v743_v53 = vadd.f32 %v742_v31, %v741_v20  ;;  %v830_v54 = vsub.f32 %v820_v50, %v825_v37  ;;  %v801_v56 = vsel %vm713_vm1, %v770_v49, 0.0  ;;  %v3167_v57 = vpop.f32.mrb[4].mxu0  ;;  %v2509_v50 = vld [vmem:[%s3699_s6 + $0x1] ss:$0 sm:$0xff] }
 0x116   :  { %v844_v21 = vadd.f32 1e-06, %v829_v47  ;;  %v740_v58 = vadd.f32 %v739_v32, %v738_v45  ;;  %v799_v59 = vrot.slane %v798_v52, 1  ;;  %v3169_v62 = vpop.f32.mrb[5].mxu0  ;;  %v803_v46 = vadd.f32 %v802_v44, %v801_v56 }
 0x117   :  { %v744_v14 = vrot.slane %v743_v53, 4  ;;  %v845_v63 = vadd.f32 1e-06, %v830_v54  ;;  %v751_v41 = vsel %vm713_vm1, %v3167_v57, 0.0  ;;  %v773_v0 = vmul.f32 %v3167_v57, %v3167_v57 }
 0x118   :  { %2758 = vrsqrt.f32 %v844_v21  ;;  %v3175_v19 = vmul.f32 0.0625, %v740_v58  ;;  %v800_v1 = vadd.f32 %v799_v59, %v798_v52  ;;  %v750_v4 = vsel %vm713_vm1, %v3169_v62, 0.0 }
 0x119   :  { %v745_v26 = vadd.f32 %v744_v14, %v743_v53  ;;  %2760 = vrsqrt.f32 %v845_v63  ;;  %v804_v5 = vrot.slane %v803_v46, 4  ;;  %v811_v35 = vsel %vm713_vm1, %v773_v0, 0.0  ;;  %v973_v0 = vld [vmem:[%s3698_s3 + $0x48] sm:$0xff] }
 0x11a   :  { %v752_v61 = vadd.f32 %v751_v41, %v750_v4  ;;  %v821_v6 = vmul.f32 0.0625, %v800_v1  ;;  %v826_v7 = vmul.f32 %v3175_v19, %v3175_v19  ;;  %v838_v10 = vsub.f32 %v3129_v60, %v3175_v19  ;;  %v972_v41 = vld [vmem:[%s3698_s3 + $0x40] sm:$0xff] }
 0x11b   :  { %v839_v12 = vsub.f32 %v3123_v55, %v3175_v19  ;;  %v746_v13 = vrot.slane %v745_v26, 2  ;;  %v805_v15 = vadd.f32 %v804_v5, %v803_v46  ;;  %v772_v27 = vmul.f32 %v3169_v62, %v3169_v62 }
 0x11c   :  { %v753_v17 = vrot.slane %v752_v61, 4  ;;  %v831_v18 = vsub.f32 %v821_v6, %v826_v7 }
 0x11d   :  { %v747_v28 = vadd.f32 %v746_v13, %v745_v26  ;;  %v806_v2 = vrot.slane %v805_v15, 2  ;;  %v810_v11 = vsel %vm713_vm1, %v772_v27, 0.0  ;;  %v2724_v13 = vpack.c.bf16 %v973_v0, %v972_v41  ;;  %v1636_v0 = vld [vmem:[%s3701_s4 + $0x38] sm:$0xff] }
 0x11e   :  { %v754_v3 = vadd.f32 %v753_v17, %v752_v61  ;;  %v846_v22 = vadd.f32 1e-06, %v831_v18  ;;  %v812_v24 = vadd.f32 %v811_v35, %v810_v11  ;;  %v2510_v17 = vld [vmem:[%s3699_s6 + $0x2] ss:$0 sm:$0xff] }
 0x11f   :  { %v748_v25 = vrot.slane %v747_v28, 1  ;;  %v807_v29 = vadd.f32 %v806_v2, %v805_v15 }
 0x120   :  { %v755_v30 = vrot.slane %v754_v3, 2  ;;  %2762 = vrsqrt.f32 %v846_v22  ;;  %v813_v36 = vrot.slane %v812_v24, 4 }
 0x121   :  { %v749_v43 = vadd.f32 %v748_v25, %v747_v28  ;;  %v808_v44 = vrot.slane %v807_v29, 1 }
 0x122   :  { %v2759_v31 = vpop.eup %2758  ;;  %v756_v45 = vadd.f32 %v755_v30, %v754_v3  ;;  %v814_v47 = vadd.f32 %v813_v36, %v812_v24 }
 0x123   :  { %v854_v38 = vmul.f32 %v2759_v31, %v834_v39  ;;  %v855_v42 = vmul.f32 %v2759_v31, %v835_v40  ;;  %v2761_v48 = vpop.eup %2760  ;;  %v3195_v37 = vmul.f32 0.0625, %v749_v43  ;;  %v809_v21 = vadd.f32 %v808_v44, %v807_v29  ;;  %v2513_v39 = vld [vmem:[%s3700_s10] ss:$0 sm:$0xff] }
 0x124   :  { %v856_v32 = vmul.f32 %v2761_v48, %v836_v9  ;;  %v857_v52 = vmul.f32 %v2761_v48, %v837_v51  ;;  %v757_v53 = vrot.slane %v756_v45, 1  ;;  %v815_v54 = vrot.slane %v814_v47, 2  ;;  %v2514_v9 = vld [vmem:[%s3700_s10 + $0x1] ss:$0 sm:$0xff] }
 0x125   :  { %v899_v20 = vmul.f32 %v2508_v34, %v854_v38  ;;  %v900_v49 = vmul.f32 %v2508_v34, %v855_v42  ;;  %v822_v40 = vmul.f32 0.0625, %v809_v21  ;;  %v827_v56 = vmul.f32 %v3195_v37, %v3195_v37 }
 0x126   :  { %v840_v58 = vsub.f32 %v3145_v16, %v3195_v37  ;;  %v841_v59 = vsub.f32 %v3139_v23, %v3195_v37  ;;  %v901_v51 = vmul.f32 %v2509_v50, %v856_v32  ;;  %v902_v14 = vmul.f32 %v2509_v50, %v857_v52  ;;  %v2517_v37 = vld [vmem:[%s3700_s10 + $0x4] ss:$0 sm:$0xff] }
 0x127   :  { %v758_v63 = vadd.f32 %v757_v53, %v756_v45  ;;  %v816_v46 = vadd.f32 %v815_v54, %v814_v47  ;;  %v832_v16 = vsub.f32 %v822_v40, %v827_v56  ;;  %v944_v1 = vadd.f32 %v2513_v39, %v899_v20  ;;  %v2512_v47 = vld [vmem:[%s3699_s6 + $0x4] ss:$0 sm:$0xff]  ;;  %v1630_v56 = vld [vmem:[%s3701_s4 + $0x8] sm:$0xff] }
 0x128   :  { %v945_v26 = vadd.f32 %v2513_v39, %v900_v49  ;;  %v946_v5 = vadd.f32 %v2514_v9, %v901_v51  ;;  %v947_v35 = vadd.f32 %v2514_v9, %v902_v14  ;;  %v1629_v40 = vld [vmem:[%s3701_s4] sm:$0xff]  ;;  %v1632_v9 = vld [vmem:[%s3701_s4 + $0x18] sm:$0xff] }
 0x129   :  { %v763_v23 = vmul.f32 0.0625, %v758_v63  ;;  %v817_v4 = vrot.slane %v816_v46, 1  ;;  %v847_v61 = vadd.f32 1e-06, %v832_v16  ;;  %v954_v6 = vmax.f32 %v944_v1, 0.0  ;;  %v1633_v14 = vld [vmem:[%s3701_s4 + $0x20] sm:$0xff] }
 0x12a   :  { %v955_v7 = vmax.f32 %v945_v26, 0.0  ;;  %v2763_v15 = vpop.eup %2762  ;;  %v956_v22 = vmax.f32 %v946_v5, 0.0  ;;  %v957_v25 = vmax.f32 %v947_v35, 0.0  ;;  %v1634_v63 = vld [vmem:[%s3701_s4 + $0x28] sm:$0xff] }
 0x12b   :  { %v818_v27 = vadd.f32 %v817_v4, %v816_v46  ;;  %v828_v18 = vmul.f32 %v763_v23, %v763_v23  ;;  %v842_v28 = vsub.f32 %v3169_v62, %v763_v23  ;;  %v843_v2 = vsub.f32 %v3167_v57, %v763_v23  ;;  %2642 = vmatprep.mubr.msk.f32.mxu1 %vm713_vm1, %v954_v6  ;;  %v2515_v57 = vld [vmem:[%s3700_s10 + $0x2] ss:$0 sm:$0xff]  ;;  %v1635_v46 = vld [vmem:[%s3701_s4 + $0x30] sm:$0xff] }
 0x12c   :  { %v858_v3 = vmul.f32 %v2763_v15, %v838_v10  ;;  %v859_v11 = vmul.f32 %v2763_v15, %v839_v12  ;;  %2764 = vrsqrt.f32 %v847_v61  ;;  %2643 = vmatmul.mubr.msk.f32.vlgmr.msra.gmra.mrb[4].mxu1 %vm713_vm1, %v955_v7  ;;  %2649 = vmatprep.mubr.msk.f32.mxu0 %vm713_vm1, %v956_v22  ;;  %v3274_v41 = vpack.c.bf16 %v1634_v63, %v1633_v14 }
 0x12d   :  { %v823_v24 = vmul.f32 0.0625, %v818_v27  ;;  %2719 = vmatpush3.bf16.msra.mxu1 %v3086_v33  ;;  %2650 = vmatmul.mubr.msk.f32.vlgmr.msra.gmra.mrb[6].mxu0 %vm713_vm1, %v957_v25  ;;  %v2511_v33 = vld [vmem:[%s3699_s6 + $0x3] ss:$0 sm:$0xff]  ;;  %v3279_v16 = vpack.c.bf16 %v1636_v0, %v1635_v46 }
 0x12e   :  { %v903_v62 = vmul.f32 %v2510_v17, %v858_v3  ;;  %v904_v29 = vmul.f32 %v2510_v17, %v859_v11  ;;  %2725 = vmatprep.subr.bf16.mxu1 %v2724_v13  ;;  %2723 = vmatpush3.bf16.msra.mxu0 %v3091_v8  ;;  %v2516_v8 = vld [vmem:[%s3700_s10 + $0x3] ss:$0 sm:$0xff] }
 0x12f   :  { %v833_v55 = vsub.f32 %v823_v24, %v828_v18 }
 0x130   :  { %v948_v60 = vadd.f32 %v2515_v57, %v903_v62  ;;  %v949_v19 = vadd.f32 %v2515_v57, %v904_v29 }
 0x131   :  { %v848_v10 = vadd.f32 1e-06, %v833_v55 }
 0x132   :  { %v958_v12 = vmax.f32 %v948_v60, 0.0  ;;  %v959_v30 = vmax.f32 %v949_v19, 0.0 }
 0x133   :  { %2766 = vrsqrt.f32 %v848_v10 }
 0x134   :  { %2656 = vmatprep.mubr.msk.f32.mxu1 %vm713_vm1, %v958_v12 }
 0x135   :  { %2657 = vmatmul.mubr.msk.f32.vlgmr.msra.gmra.mrb[6].mxu1 %vm713_vm1, %v959_v30 }
 0x136   :  { %v2765_v31 = vpop.eup %2764  ;;  %2727 = vmatpush3.bf16.msra.mxu1 %v2724_v13 }
 0x137   :  { %v860_v34 = vmul.f32 %v2765_v31, %v840_v58  ;;  %v861_v36 = vmul.f32 %v2765_v31, %v841_v59  ;;  %v1631_v58 = vld [vmem:[%s3701_s4 + $0x10] sm:$0xff]  ;;  %v2728_v59 = vpack.c.bf16 %v1630_v56, %v1629_v40 }
 0x138   :  { %v2732_v51 = vpack.c.bf16 %v1632_v9, %v1631_v58 }
 0x139   :  { %v905_v38 = vmul.f32 %v2511_v33, %v860_v34  ;;  %v906_v42 = vmul.f32 %v2511_v33, %v861_v36  ;;  %2729 = vmatprep.subr.bf16.mxu0 %v2728_v59 }
 0x13a   :  { %2733 = vmatprep.subr.bf16.mxu1 %v2732_v51 }
 0x13b   :  { %v950_v43 = vadd.f32 %v2516_v8, %v905_v38  ;;  %v951_v44 = vadd.f32 %v2516_v8, %v906_v42 }
 0x13d   :  { %v2767_v45 = vpop.eup %2766  ;;  %v960_v48 = vmax.f32 %v950_v43, 0.0  ;;  %v961_v20 = vmax.f32 %v951_v44, 0.0 }
 0x13e   :  { %v862_v49 = vmul.f32 %v2767_v45, %v842_v28  ;;  %v863_v50 = vmul.f32 %v2767_v45, %v843_v2 }
 0x13f   :  { %2663 = vmatprep.mubr.msk.f32.mxu0 %vm713_vm1, %v960_v48 }
 0x140   :  { %v907_v21 = vmul.f32 %v2512_v47, %v862_v49  ;;  %v908_v32 = vmul.f32 %v2512_v47, %v863_v50  ;;  %2664 = vmatmul.mubr.msk.f32.vlgmr.msra.gmra.mrb[8].mxu0 %vm713_vm1, %v961_v20 }
 0x141   :  { %2731 = vmatpush3.bf16.msra.mxu0 %v2728_v59 }
 0x142   :  { %v952_v52 = vadd.f32 %v2517_v37, %v907_v21  ;;  %v953_v53 = vadd.f32 %v2517_v37, %v908_v32  ;;  %2737 = vmatprep.subr.bf16.mxu0 %v3274_v41 }
 0x144   :  { %v962_v54 = vmax.f32 %v952_v52, 0.0  ;;  %v963_v39 = vmax.f32 %v953_v53, 0.0 }
 0x146   :  { %2670 = vmatprep.mubr.msk.f32.mxu1 %vm713_vm1, %v962_v54 }
 0x147   :  { %2671 = vmatmul.mubr.msk.f32.vlgmr.msra.gmra.mrb[8].mxu1 %vm713_vm1, %v963_v39 }
 0x148   :  { %2735 = vmatpush3.bf16.msra.mxu1 %v2732_v51 }
 0x149   :  { %2741 = vmatprep.subr.bf16.mxu1 %v3279_v16 }
 0x1ff   :  { %v3283_v1 = vpop.f32.mrb[4].mxu1 }
 0x200   :  { %v1380_v26 = vsel %vm713_vm1, %v3283_v1, 0.0  ;;  %v1430_v23 = vmul.f32 %v3283_v1, %v3283_v1  ;;  %v3289_v4 = vpop.f32.mrb[5].mxu1  ;;  %v3291_v5 = vpop.f32.mrb[6].mxu0 }
 0x201   :  { %v1379_v35 = vsel %vm713_vm1, %v3289_v4, 0.0  ;;  %v1429_v61 = vmul.f32 %v3289_v4, %v3289_v4  ;;  %v1389_v7 = vsel %vm713_vm1, %v3291_v5, 0.0  ;;  %v1432_v13 = vmul.f32 %v3291_v5, %v3291_v5  ;;  %v3302_v17 = vpop.f32.mrb[7].mxu0 }
 0x202   :  { %v1440_v6 = vsel %vm713_vm1, %v1430_v23, 0.0  ;;  %v1381_v15 = vadd.f32 %v1380_v26, %v1379_v35  ;;  %v1388_v18 = vsel %vm713_vm1, %v3302_v17, 0.0  ;;  %v1431_v28 = vmul.f32 %v3302_v17, %v3302_v17 }
 0x203   :  { %v1439_v27 = vsel %vm713_vm1, %v1429_v61, 0.0  ;;  %v1449_v2 = vsel %vm713_vm1, %v1432_v13, 0.0  ;;  %v1390_v22 = vadd.f32 %v1389_v7, %v1388_v18 }
 0x204   :  { %v1382_v3 = vrot.slane %v1381_v15, 4  ;;  %v1441_v11 = vadd.f32 %v1440_v6, %v1439_v27  ;;  %v1448_v24 = vsel %vm713_vm1, %v1431_v28, 0.0 }
 0x205   :  { %v1391_v62 = vrot.slane %v1390_v22, 4  ;;  %v1450_v29 = vadd.f32 %v1449_v2, %v1448_v24 }
 0x206   :  { %v1383_v25 = vadd.f32 %v1382_v3, %v1381_v15  ;;  %v1442_v57 = vrot.slane %v1441_v11, 4 }
 0x207   :  { %v1392_v10 = vadd.f32 %v1391_v62, %v1390_v22  ;;  %v1451_v12 = vrot.slane %v1450_v29, 4 }
 0x208   :  { %v3311_v55 = vpop.f32.mrb[6].mxu1  ;;  %v1384_v60 = vrot.slane %v1383_v25, 2  ;;  %v1443_v19 = vadd.f32 %v1442_v57, %v1441_v11 }
 0x209   :  { %v3313_v30 = vpop.f32.mrb[7].mxu1  ;;  %v1398_v31 = vsel %vm713_vm1, %v3311_v55, 0.0  ;;  %v1434_v33 = vmul.f32 %v3311_v55, %v3311_v55  ;;  %v1393_v42 = vrot.slane %v1392_v10, 2  ;;  %v1452_v43 = vadd.f32 %v1451_v12, %v1450_v29 }
 0x20a   :  { %v1397_v34 = vsel %vm713_vm1, %v3313_v30, 0.0  ;;  %v1433_v36 = vmul.f32 %v3313_v30, %v3313_v30  ;;  %v1385_v8 = vadd.f32 %v1384_v60, %v1383_v25  ;;  %v1444_v38 = vrot.slane %v1443_v19, 2 }
 0x20b   :  { %v1458_v44 = vsel %vm713_vm1, %v1434_v33, 0.0  ;;  %v1399_v45 = vadd.f32 %v1398_v31, %v1397_v34  ;;  %v1394_v49 = vadd.f32 %v1393_v42, %v1392_v10  ;;  %v1453_v50 = vrot.slane %v1452_v43, 2 }
 0x20c   :  { %v1457_v47 = vsel %vm713_vm1, %v1433_v36, 0.0  ;;  %v1386_v48 = vrot.slane %v1385_v8, 1  ;;  %v1445_v20 = vadd.f32 %v1444_v38, %v1443_v19 }
 0x20d   :  { %v1400_v37 = vrot.slane %v1399_v45, 4  ;;  %v1459_v21 = vadd.f32 %v1458_v44, %v1457_v47  ;;  %v1395_v53 = vrot.slane %v1394_v49, 1  ;;  %v1454_v54 = vadd.f32 %v1453_v50, %v1452_v43 }
 0x20e   :  { %v1387_v32 = vadd.f32 %v1386_v48, %v1385_v8  ;;  %v1446_v52 = vrot.slane %v1445_v20, 1 }
 0x20f   :  { %v1401_v39 = vadd.f32 %v1400_v37, %v1399_v45  ;;  %v1460_v40 = vrot.slane %v1459_v21, 4  ;;  %v1396_v59 = vadd.f32 %v1395_v53, %v1394_v49  ;;  %v1455_v9 = vrot.slane %v1454_v54, 1 }
 0x210   :  { %v3325_v56 = vmul.f32 0.0625, %v1387_v32  ;;  %v1447_v58 = vadd.f32 %v1446_v52, %v1445_v20 }
 0x211   :  { %v1402_v51 = vrot.slane %v1401_v39, 2  ;;  %v1461_v14 = vadd.f32 %v1460_v40, %v1459_v21  ;;  %v3335_v35 = vmul.f32 0.0625, %v1396_v59  ;;  %v1456_v61 = vadd.f32 %v1455_v9, %v1454_v54 }
 0x212   :  { %v1484_v63 = vmul.f32 0.0625, %v1447_v58  ;;  %v1489_v46 = vmul.f32 %v3325_v56, %v3325_v56  ;;  %v1499_v0 = vsub.f32 %v3289_v4, %v3325_v56  ;;  %v1500_v26 = vsub.f32 %v3283_v1, %v3325_v56 }
 0x213   :  { %v3333_v23 = vpop.f32.mrb[8].mxu0  ;;  %v1403_v27 = vadd.f32 %v1402_v51, %v1401_v39  ;;  %v1462_v18 = vrot.slane %v1461_v14, 2  ;;  %v1485_v1 = vmul.f32 0.0625, %v1456_v61  ;;  %v1490_v28 = vmul.f32 %v3335_v35, %v3335_v35 }
 0x214   :  { %v1407_v6 = vsel %vm713_vm1, %v3333_v23, 0.0  ;;  %v1436_v7 = vmul.f32 %v3333_v23, %v3333_v23  ;;  %v3341_v13 = vpop.f32.mrb[9].mxu0  ;;  %v1494_v15 = vsub.f32 %v1484_v63, %v1489_v46  ;;  %v1501_v2 = vsub.f32 %v3302_v17, %v3335_v35 }
 0x215   :  { %v1406_v4 = vsel %vm713_vm1, %v3341_v13, 0.0  ;;  %v1502_v3 = vsub.f32 %v3291_v5, %v3335_v35  ;;  %v1404_v22 = vrot.slane %v1403_v27, 1  ;;  %v1463_v24 = vadd.f32 %v1462_v18, %v1461_v14  ;;  %v2528_v14 = vld [vmem:[%s3702_s7] ss:$0 sm:$0xff] }
 0x216   :  { %v1509_v11 = vadd.f32 1e-06, %v1494_v15  ;;  %v1495_v25 = vsub.f32 %v1485_v1, %v1490_v28  ;;  %v1467_v57 = vsel %vm713_vm1, %v1436_v7, 0.0  ;;  %v1408_v62 = vadd.f32 %v1407_v6, %v1406_v4  ;;  %v2529_v4 = vld [vmem:[%s3702_s7 + $0x1] ss:$0 sm:$0xff] }
 0x217   :  { %v1435_v29 = vmul.f32 %v3341_v13, %v3341_v13  ;;  %v1405_v60 = vadd.f32 %v1404_v22, %v1403_v27  ;;  %v1464_v19 = vrot.slane %v1463_v24, 1 }
 0x218   :  { %2768 = vrsqrt.f32 %v1509_v11  ;;  %v1510_v10 = vadd.f32 1e-06, %v1495_v25  ;;  %v1409_v12 = vrot.slane %v1408_v62, 4 }
 0x219   :  { %v1466_v17 = vsel %vm713_vm1, %v1435_v29, 0.0  ;;  %v3357_v5 = vmul.f32 0.0625, %v1405_v60  ;;  %v1465_v33 = vadd.f32 %v1464_v19, %v1463_v24 }
 0x21a   :  { %v3355_v31 = vpop.f32.mrb[8].mxu1  ;;  %v1468_v34 = vadd.f32 %v1467_v57, %v1466_v17  ;;  %2770 = vrsqrt.f32 %v1510_v10  ;;  %v1410_v38 = vadd.f32 %v1409_v12, %v1408_v62 }
 0x21b   :  { %v1416_v36 = vsel %vm713_vm1, %v3355_v31, 0.0  ;;  %v3361_v8 = vpop.f32.mrb[9].mxu1  ;;  %v1438_v42 = vmul.f32 %v3355_v31, %v3355_v31  ;;  %v1486_v44 = vmul.f32 0.0625, %v1465_v33  ;;  %v1491_v45 = vmul.f32 %v3357_v5, %v3357_v5 }
 0x21c   :  { %v1415_v43 = vsel %vm713_vm1, %v3361_v8, 0.0  ;;  %v1503_v47 = vsub.f32 %v3313_v30, %v3357_v5  ;;  %v1504_v48 = vsub.f32 %v3311_v55, %v3357_v5  ;;  %v1411_v20 = vrot.slane %v1410_v38, 2  ;;  %v2535_v30 = vld [vmem:[%s3703_s11 + $0x2] ss:$0 sm:$0xff] }
 0x21d   :  { %v1469_v49 = vrot.slane %v1468_v34, 4  ;;  %v1417_v50 = vadd.f32 %v1416_v36, %v1415_v43  ;;  %v1496_v37 = vsub.f32 %v1486_v44, %v1491_v45  ;;  %v1476_v21 = vsel %vm713_vm1, %v1438_v42, 0.0 }
 0x21e   :  { %v1437_v32 = vmul.f32 %v3361_v8, %v3361_v8  ;;  %v1412_v52 = vadd.f32 %v1411_v20, %v1410_v38 }
 0x21f   :  { %v1470_v53 = vadd.f32 %v1469_v49, %v1468_v34  ;;  %v1418_v54 = vrot.slane %v1417_v50, 4  ;;  %v1511_v39 = vadd.f32 1e-06, %v1496_v37  ;;  %v2530_v49 = vld [vmem:[%s3702_s7 + $0x2] ss:$0 sm:$0xff] }
 0x220   :  { %v1475_v40 = vsel %vm713_vm1, %v1437_v32, 0.0  ;;  %v1413_v56 = vrot.slane %v1412_v52, 1 }
 0x221   :  { %v1471_v58 = vrot.slane %v1470_v53, 2  ;;  %v1419_v59 = vadd.f32 %v1418_v54, %v1417_v50  ;;  %v1477_v9 = vadd.f32 %v1476_v21, %v1475_v40  ;;  %2772 = vrsqrt.f32 %v1511_v39 }
 0x222   :  { %v2769_v51 = vpop.eup %2768  ;;  %v1414_v35 = vadd.f32 %v1413_v56, %v1412_v52 }
 0x223   :  { %v1519_v63 = vmul.f32 %v2769_v51, %v1499_v0  ;;  %v1520_v46 = vmul.f32 %v2769_v51, %v1500_v26  ;;  %v1472_v61 = vadd.f32 %v1471_v58, %v1470_v53  ;;  %v1420_v6 = vrot.slane %v1419_v59, 2  ;;  %v2533_v0 = vld [vmem:[%s3703_s11] ss:$0 sm:$0xff] }
 0x224   :  { %v1478_v7 = vrot.slane %v1477_v9, 4  ;;  %v2771_v15 = vpop.eup %2770  ;;  %v3383_v1 = vmul.f32 0.0625, %v1414_v35  ;;  %v2536_v35 = vld [vmem:[%s3703_s11 + $0x3] ss:$0 sm:$0xff] }
 0x225   :  { %v1564_v27 = vmul.f32 %v2528_v14, %v1519_v63  ;;  %v1565_v18 = vmul.f32 %v2528_v14, %v1520_v46  ;;  %v1473_v28 = vrot.slane %v1472_v61, 1  ;;  %v1521_v11 = vmul.f32 %v2771_v15, %v1501_v2  ;;  %v2534_v2 = vld [vmem:[%s3703_s11 + $0x1] ss:$0 sm:$0xff] }
 0x226   :  { %v1522_v22 = vmul.f32 %v2771_v15, %v1502_v3  ;;  %v1421_v24 = vadd.f32 %v1420_v6, %v1419_v59  ;;  %v1479_v25 = vadd.f32 %v1478_v7, %v1477_v9  ;;  %v1492_v57 = vmul.f32 %v3383_v1, %v3383_v1 }
 0x227   :  { %v1474_v26 = vadd.f32 %v1473_v28, %v1472_v61  ;;  %v1505_v62 = vsub.f32 %v3341_v13, %v3383_v1  ;;  %v1506_v29 = vsub.f32 %v3333_v23, %v3383_v1  ;;  %v1566_v3 = vmul.f32 %v2529_v4, %v1521_v11  ;;  %v1637_v13 = vld [vmem:[%s3701_s4 + $0x40] sm:$0xff]  ;;  %v1638_v23 = vld [vmem:[%s3701_s4 + $0x48] sm:$0xff] }
 0x228   :  { %v1567_v60 = vmul.f32 %v2529_v4, %v1522_v22  ;;  %v1422_v19 = vrot.slane %v1421_v24, 1  ;;  %v1480_v10 = vrot.slane %v1479_v25, 2  ;;  %v1609_v17 = vadd.f32 %v2533_v0, %v1564_v27  ;;  %v2537_v22 = vld [vmem:[%s3703_s11 + $0x4] ss:$0 sm:$0xff] }
 0x229   :  { %v1487_v12 = vmul.f32 0.0625, %v1474_v26  ;;  %v1610_v33 = vadd.f32 %v2533_v0, %v1565_v18  ;;  %v1611_v38 = vadd.f32 %v2534_v2, %v1566_v3  ;;  %v2744_v39 = vpack.c.bf16 %v1638_v23, %v1637_v13  ;;  %v2532_v18 = vld [vmem:[%s3702_s7 + $0x4] ss:$0 sm:$0xff] }
 0x22a   :  { %v1423_v34 = vadd.f32 %v1422_v19, %v1421_v24  ;;  %v1481_v36 = vadd.f32 %v1480_v10, %v1479_v25  ;;  %v1612_v42 = vadd.f32 %v2534_v2, %v1567_v60  ;;  %v1619_v44 = vmax.f32 %v1609_v17, 0.0  ;;  %v2295_v2 = vld [vmem:[%s3704_s1 + $0x8] sm:$0xff] }
 0x22b   :  { %v1497_v43 = vsub.f32 %v1487_v12, %v1492_v57  ;;  %v1620_v45 = vmax.f32 %v1610_v33, 0.0  ;;  %v2773_v20 = vpop.eup %2772  ;;  %v1621_v21 = vmax.f32 %v1611_v38, 0.0  ;;  %v2305_v60 = vsel %vm61_vm0, %v2295_v2, 0.0 }
 0x22c   :  { %v1428_v50 = vmul.f32 0.0625, %v1423_v34  ;;  %v1482_v37 = vrot.slane %v1481_v36, 1  ;;  %v1622_v32 = vmax.f32 %v1612_v42, 0.0  ;;  %v1523_v52 = vmul.f32 %v2773_v20, %v1503_v47  ;;  %2677 = vmatprep.mubr.msk.f32.mxu0 %vm713_vm1, %v1619_v44  ;;  %v2349_v34 = vld [vmem:[%s3705_s14] sm:$0x1]  ;;  %v2296_v44 = vld [vmem:[%s3704_s1 + $0x10] sm:$0xff] }
 0x22d   :  { %v1524_v53 = vmul.f32 %v2773_v20, %v1504_v48  ;;  %v1512_v54 = vadd.f32 1e-06, %v1497_v43  ;;  %2684 = vmatprep.mubr.msk.f32.mxu1 %vm713_vm1, %v1621_v21  ;;  %2678 = vmatmul.mubr.msk.f32.vlgmr.msra.gmra.mrb[10].mxu0 %vm713_vm1, %v1620_v45  ;;  %v2297_v45 = vld [vmem:[%s3704_s1 + $0x18] sm:$0xff]  ;;  %v2298_v20 = vld [vmem:[%s3704_s1 + $0x20] sm:$0xff] }
 0x22e   :  { %v1483_v40 = vadd.f32 %v1482_v37, %v1481_v36  ;;  %v1493_v56 = vmul.f32 %v1428_v50, %v1428_v50  ;;  %v1507_v58 = vsub.f32 %v3361_v8, %v1428_v50  ;;  %v1508_v59 = vsub.f32 %v3355_v31, %v1428_v50  ;;  %2685 = vmatmul.mubr.msk.f32.vlgmr.msra.gmra.mrb[10].mxu1 %vm713_vm1, %v1622_v32 }
 0x22f   :  { %v1568_v47 = vmul.f32 %v2530_v49, %v1523_v52  ;;  %v1569_v9 = vmul.f32 %v2530_v49, %v1524_v53  ;;  %2774 = vrsqrt.f32 %v1512_v54  ;;  %2739 = vmatpush3.bf16.msra.mxu0 %v3274_v41  ;;  %2743 = vmatpush3.bf16.msra.mxu1 %v3279_v16  ;;  %v2531_v41 = vld [vmem:[%s3702_s7 + $0x3] ss:$0 sm:$0xff]  ;;  %v2350_v36 = vmul.f32 %v2349_v34, %v2349_v34  ;;  %v2299_v49 = vld [vmem:[%s3704_s1 + $0x28] sm:$0xff] }
 0x230   :  { %v1488_v55 = vmul.f32 0.0625, %v1483_v40  ;;  %2745 = vmatprep.subr.bf16.mxu0 %v2744_v39  ;;  %v2313_v50 = vsel %vm61_vm0, %v2296_v44, 0.0  ;;  %v2314_v37 = vsel %vm61_vm0, %v2297_v45, 0.0  ;;  %v2322_v21 = vsel %vm61_vm0, %v2298_v20, 0.0 }
 0x231   :  { %v1613_v5 = vadd.f32 %v2535_v30, %v1568_v47  ;;  %v1614_v31 = vadd.f32 %v2535_v30, %v1569_v9  ;;  %v2352_v42 = vsel %vm2351_vm2, %v2350_v36, 0.0  ;;  %v2323_v32 = vsel %vm61_vm0, %v2299_v49, 0.0 }
 0x232   :  { %v1498_v8 = vsub.f32 %v1488_v55, %v1493_v56  ;;  %2353 = vadd.xlane.f32.xlu0 %v2352_v42  ;;  %v2315_v54 = vadd.f32 %v2314_v37, %v2313_v50 }
 0x233   :  { %v1623_v48 = vmax.f32 %v1613_v5, 0.0  ;;  %v1624_v51 = vmax.f32 %v1614_v31, 0.0 }
 0x234   :  { %v1513_v14 = vadd.f32 1e-06, %v1498_v8 }
 0x235   :  { %2691 = vmatprep.mubr.msk.f32.mxu0 %vm713_vm1, %v1623_v48 }
 0x236   :  { %2776 = vrsqrt.f32 %v1513_v14  ;;  %2692 = vmatmul.mubr.msk.f32.vlgmr.msra.gmra.mrb[12].mxu0 %vm713_vm1, %v1624_v51 }
 0x237   :  { %2747 = vmatpush3.bf16.msra.mxu0 %v2744_v39  ;;  %v2324_v39 = vadd.f32 %v2323_v32, %v2322_v21 }
 0x239   :  { %v2775_v63 = vpop.eup %2774 }
 0x23a   :  { %v1525_v46 = vmul.f32 %v2775_v63, %v1505_v62  ;;  %v1526_v16 = vmul.f32 %v2775_v63, %v1506_v29  ;;  %v2294_v29 = vld [vmem:[%s3704_s1] sm:$0xff]  ;;  %v2300_v63 = vld [vmem:[%s3704_s1 + $0x30] sm:$0xff] }
 0x23b   :  { %v2304_v3 = vsel %vm61_vm0, %v2294_v29, 0.0 }
 0x23c   :  { %v1570_v61 = vmul.f32 %v2531_v41, %v1525_v46  ;;  %v1571_v6 = vmul.f32 %v2531_v41, %v1526_v16  ;;  %v2306_v19 = vadd.f32 %v2305_v60, %v2304_v3 }
 0x23e   :  { %v1615_v7 = vadd.f32 %v2536_v35, %v1570_v61  ;;  %v1616_v15 = vadd.f32 %v2536_v35, %v1571_v6  ;;  %v2307_v10 = vrot.slane %v2306_v19, 4 }
 0x240   :  { %v2777_v27 = vpop.eup %2776  ;;  %v1625_v4 = vmax.f32 %v1615_v7, 0.0  ;;  %v1626_v1 = vmax.f32 %v1616_v15, 0.0  ;;  %v2308_v12 = vadd.f32 %v2307_v10, %v2306_v19  ;;  %v2301_v7 = vld [vmem:[%s3704_s1 + $0x38] sm:$0xff]  ;;  %v2302_v15 = vld [vmem:[%s3704_s1 + $0x40] sm:$0xff]  ;;  %v2303_v19 = vld [vmem:[%s3704_s1 + $0x48] sm:$0xff] }
 0x241   :  { %v1527_v28 = vmul.f32 %v2777_v27, %v1507_v58  ;;  %v1528_v11 = vmul.f32 %v2777_v27, %v1508_v59  ;;  %v2316_v27 = vrot.slane %v2315_v54, 4  ;;  %v2341_v44 = vsel %vm61_vm0, %v2303_v19, 0.0 }
 0x242   :  { %2698 = vmatprep.mubr.msk.f32.mxu1 %vm713_vm1, %v1625_v4  ;;  %v2309_v17 = vrot.slane %v2308_v12, 2  ;;  %v2331_v4 = vsel %vm61_vm0, %v2300_v63, 0.0 }
 0x243   :  { %v1572_v24 = vmul.f32 %v2532_v18, %v1527_v28  ;;  %v1573_v25 = vmul.f32 %v2532_v18, %v1528_v11  ;;  %2699 = vmatmul.mubr.msk.f32.vlgmr.msra.gmra.mrb[12].mxu1 %vm713_vm1, %v1626_v1  ;;  %v2325_v18 = vrot.slane %v2324_v39, 4 }
 0x244   :  { %v2310_v33 = vadd.f32 %v2309_v17, %v2308_v12 }
 0x245   :  { %v1617_v0 = vadd.f32 %v2537_v22, %v1572_v24  ;;  %v1618_v26 = vadd.f32 %v2537_v22, %v1573_v25 }
 0x246   :  { %v2311_v38 = vrot.slane %v2310_v33, 1 }
 0x247   :  { %v1627_v57 = vmax.f32 %v1617_v0, 0.0  ;;  %v1628_v62 = vmax.f32 %v1618_v26, 0.0 }
 0x248   :  { %v2312_v13 = vadd.f32 %v2311_v38, %v2310_v33  ;;  %v2317_v33 = vadd.f32 %v2316_v27, %v2315_v54 }
 0x249   :  { %2705 = vmatprep.mubr.msk.f32.mxu0 %vm713_vm1, %v1627_v57  ;;  %v2332_v57 = vsel %vm61_vm0, %v2301_v7, 0.0 }
 0x24a   :  { %2706 = vmatmul.mubr.msk.f32.vlgmr.msra.gmra.mrb[14].mxu0 %vm713_vm1, %v1628_v62  ;;  %v2356_v23 = vmul.f32 %v2349_v34, %v2312_v13  ;;  %v2340_v62 = vsel %vm61_vm0, %v2302_v15, 0.0  ;;  %v2318_v32 = vrot.slane %v2317_v33, 2 }
 0x24c   :  { %v2357_v43 = vsel %vm2351_vm2, %v2356_v23, 0.0 }
 0x24d   :  { %2358 = vadd.xlane.f32.xlu1 %v2357_v43  ;;  %v2333_v43 = vadd.f32 %v2332_v57, %v2331_v4 }
 0x300   :  { %v3468_v52 = vpop.f32.mrb[10].mxu0 }
 0x301   :  { %v3470_v53 = vpop.f32.mrb[10].mxu1  ;;  %v2045_v40 = vsel %vm61_vm0, %v3468_v52, 0.0  ;;  %v2095_v56 = vmul.f32 %v3468_v52, %v3468_v52  ;;  %v3480_v30 = vpop.f32.mrb[11].mxu0 }
 0x302   :  { %v2054_v58 = vsel %vm61_vm0, %v3470_v53, 0.0  ;;  %v2097_v59 = vmul.f32 %v3470_v53, %v3470_v53  ;;  %v3482_v47 = vpop.f32.mrb[11].mxu1  ;;  %v2044_v9 = vsel %vm61_vm0, %v3480_v30, 0.0  ;;  %v2094_v55 = vmul.f32 %v3480_v30, %v3480_v30 }
 0x303   :  { %v2053_v5 = vsel %vm61_vm0, %v3482_v47, 0.0  ;;  %v2096_v31 = vmul.f32 %v3482_v47, %v3482_v47  ;;  %v2105_v8 = vsel %vm61_vm0, %v2095_v56, 0.0  ;;  %v2046_v51 = vadd.f32 %v2045_v40, %v2044_v9 }
 0x304   :  { %v2114_v48 = vsel %vm61_vm0, %v2097_v59, 0.0  ;;  %v2055_v14 = vadd.f32 %v2054_v58, %v2053_v5  ;;  %v2104_v41 = vsel %vm61_vm0, %v2094_v55, 0.0  ;;  %v2326_v40 = vadd.f32 %v2325_v18, %v2324_v39 }
 0x305   :  { %v2113_v46 = vsel %vm61_vm0, %v2096_v31, 0.0  ;;  %v2047_v16 = vrot.slane %v2046_v51, 4  ;;  %v2106_v35 = vadd.f32 %v2105_v8, %v2104_v41  ;;  %v2334_v5 = vrot.slane %v2333_v43, 4 }
 0x306   :  { %v2056_v61 = vrot.slane %v2055_v14, 4  ;;  %v2115_v6 = vadd.f32 %v2114_v48, %v2113_v46  ;;  %v3526_v31 = vadd.f32 %v2341_v44, %v2340_v62  ;;  %v3532_v46 = vadd.f32 %v2318_v32, %v2317_v33 }
 0x307   :  { %v2048_v1 = vadd.f32 %v2047_v16, %v2046_v51  ;;  %v2107_v28 = vrot.slane %v2106_v35, 4  ;;  %v2327_v39 = vrot.slane %v2326_v40, 2 }
 0x308   :  { %v2057_v11 = vadd.f32 %v2056_v61, %v2055_v14  ;;  %v2116_v22 = vrot.slane %v2115_v6, 4 }
 0x309   :  { %v3506_v24 = vpop.f32.mrb[12].mxu0  ;;  %v2049_v29 = vrot.slane %v2048_v1, 2  ;;  %v2108_v2 = vadd.f32 %v2107_v28, %v2106_v35 }
 0x30a   :  { %v2063_v25 = vsel %vm61_vm0, %v3506_v24, 0.0  ;;  %v2099_v0 = vmul.f32 %v3506_v24, %v3506_v24  ;;  %v3512_v26 = vpop.f32.mrb[13].mxu0  ;;  %v2058_v3 = vrot.slane %v2057_v11, 2  ;;  %v2117_v60 = vadd.f32 %v2116_v22, %v2115_v6 }
 0x30b   :  { %v2062_v12 = vsel %vm61_vm0, %v3512_v26, 0.0  ;;  %v2098_v17 = vmul.f32 %v3512_v26, %v3512_v26  ;;  %v2050_v34 = vadd.f32 %v2049_v29, %v2048_v1  ;;  %v2109_v36 = vrot.slane %v2108_v2, 2 }
 0x30c   :  { %v2123_v10 = vsel %vm61_vm0, %v2099_v0, 0.0  ;;  %v2059_v38 = vadd.f32 %v2058_v3, %v2057_v11  ;;  %v2118_v42 = vrot.slane %v2117_v60, 2  ;;  %v2064_v13 = vadd.f32 %v2063_v25, %v2062_v12 }
 0x30d   :  { %v2122_v23 = vsel %vm61_vm0, %v2098_v17, 0.0  ;;  %v2051_v45 = vrot.slane %v2050_v34, 1  ;;  %v2110_v20 = vadd.f32 %v2109_v36, %v2108_v2 }
 0x30e   :  { %v2060_v49 = vrot.slane %v2059_v38, 1  ;;  %v2119_v50 = vadd.f32 %v2118_v42, %v2117_v60  ;;  %v2065_v37 = vrot.slane %v2064_v13, 4  ;;  %v2124_v21 = vadd.f32 %v2123_v10, %v2122_v23 }
 0x30f   :  { %v2052_v56 = vadd.f32 %v2051_v45, %v2050_v34  ;;  %v2111_v54 = vrot.slane %v2110_v20, 1 }
 0x310   :  { %v2061_v58 = vadd.f32 %v2060_v49, %v2059_v38  ;;  %v2120_v59 = vrot.slane %v2119_v50, 1  ;;  %v2066_v9 = vadd.f32 %v2065_v37, %v2064_v13  ;;  %v2125_v55 = vrot.slane %v2124_v21, 4 }
 0x311   :  { %v3528_v8 = vmul.f32 0.0625, %v2052_v56  ;;  %v2112_v48 = vadd.f32 %v2111_v54, %v2110_v20  ;;  %v2335_v38 = vadd.f32 %v2334_v5, %v2333_v43  ;;  %v2320_v20 = vrot.slane %v3532_v46, 1 }
 0x312   :  { %v3530_v51 = vmul.f32 0.0625, %v2061_v58  ;;  %v2121_v14 = vadd.f32 %v2120_v59, %v2119_v50  ;;  %v2067_v63 = vrot.slane %v2066_v9, 2  ;;  %v2126_v41 = vadd.f32 %v2125_v55, %v2124_v21 }
 0x313   :  { %v2149_v16 = vmul.f32 0.0625, %v2112_v48  ;;  %v2154_v35 = vmul.f32 %v3528_v8, %v3528_v8  ;;  %v2164_v61 = vsub.f32 %v3480_v30, %v3528_v8  ;;  %v2165_v25 = vsub.f32 %v3468_v52, %v3528_v8  ;;  %v2549_v30 = vld [vmem:[%s3706_s8 + $0x1] ss:$0 sm:$0xff] }
 0x314   :  { %v2150_v6 = vmul.f32 0.0625, %v2121_v14  ;;  %v2155_v7 = vmul.f32 %v3530_v51, %v3530_v51  ;;  %v2166_v15 = vsub.f32 %v3482_v47, %v3530_v51  ;;  %v2068_v18 = vadd.f32 %v2067_v63, %v2066_v9 }
 0x315   :  { %v2127_v4 = vrot.slane %v2126_v41, 2  ;;  %v2159_v1 = vsub.f32 %v2149_v16, %v2154_v35  ;;  %v2167_v33 = vsub.f32 %v3470_v53, %v3530_v51  ;;  %v3565_v49 = vadd.f32 %v2327_v39, %v2326_v40 }
 0x316   :  { %v3542_v27 = vpop.f32.mrb[12].mxu1  ;;  %v2160_v0 = vsub.f32 %v2150_v6, %v2155_v7  ;;  %v2069_v57 = vrot.slane %v2068_v18, 1  ;;  %v2343_v50 = vrot.slane %v3526_v31, 4 }
 0x317   :  { %v2072_v28 = vsel %vm61_vm0, %v3542_v27, 0.0  ;;  %v2101_v11 = vmul.f32 %v3542_v27, %v3542_v27  ;;  %v3548_v22 = vpop.f32.mrb[13].mxu1  ;;  %v2128_v62 = vadd.f32 %v2127_v4, %v2126_v41  ;;  %v2174_v2 = vadd.f32 1e-06, %v2159_v1 }
 0x318   :  { %v2071_v29 = vsel %vm61_vm0, %v3548_v22, 0.0  ;;  %v2100_v19 = vmul.f32 %v3548_v22, %v3548_v22  ;;  %v2175_v10 = vadd.f32 1e-06, %v2160_v0  ;;  %v2070_v12 = vadd.f32 %v2069_v57, %v2068_v18 }
 0x319   :  { %v2132_v3 = vsel %vm61_vm0, %v2101_v11, 0.0  ;;  %v2073_v60 = vadd.f32 %v2072_v28, %v2071_v29  ;;  %v2129_v17 = vrot.slane %v2128_v62, 1  ;;  %2778 = vrsqrt.f32 %v2174_v2  ;;  %v2548_v29 = vld [vmem:[%s3706_s8] ss:$0 sm:$0xff] }
 0x31a   :  { %v2131_v36 = vsel %vm61_vm0, %v2100_v19, 0.0  ;;  %2780 = vrsqrt.f32 %v2175_v10  ;;  %v3560_v42 = vmul.f32 0.0625, %v2070_v12  ;;  %v2336_v41 = vrot.slane %v2335_v38, 2 }
 0x31b   :  { %v2074_v34 = vrot.slane %v2073_v60, 4  ;;  %v2130_v13 = vadd.f32 %v2129_v17, %v2128_v62  ;;  %v2133_v23 = vadd.f32 %v2132_v3, %v2131_v36  ;;  %v2329_v4 = vrot.slane %v3565_v49, 1  ;;  %v2553_v36 = vld [vmem:[%s3707_s12] ss:$0 sm:$0xff] }
 0x31c   :  { %v2156_v37 = vmul.f32 %v3560_v42, %v3560_v42  ;;  %v2168_v43 = vsub.f32 %v3512_v26, %v3560_v42  ;;  %v2169_v63 = vsub.f32 %v3506_v24, %v3560_v42  ;;  %v3588_v11 = vadd.f32 %v2343_v50, %v3526_v31 }
 0x31d   :  { %v2075_v44 = vadd.f32 %v2074_v34, %v2073_v60  ;;  %v3562_v45 = vpop.f32.mrb[14].mxu0  ;;  %v2151_v53 = vmul.f32 0.0625, %v2130_v13  ;;  %v2134_v21 = vrot.slane %v2133_v23, 4  ;;  %v2321_v2 = vadd.f32 %v2320_v20, %v3532_v46 }
 0x31e   :  { %v3572_v32 = vpop.f32.mrb[15].mxu0  ;;  %v2081_v54 = vsel %vm61_vm0, %v3562_v45, 0.0  ;;  %v2103_v40 = vmul.f32 %v3562_v45, %v3562_v45  ;;  %v3594_v3 = vadd.f32 %v2336_v41, %v2335_v38 }
 0x31f   :  { %v2076_v56 = vrot.slane %v2075_v44, 2  ;;  %v2080_v58 = vsel %vm61_vm0, %v3572_v32, 0.0  ;;  %v2161_v59 = vsub.f32 %v2151_v53, %v2156_v37  ;;  %v2135_v9 = vadd.f32 %v2134_v21, %v2133_v23  ;;  %v2554_v23 = vld [vmem:[%s3707_s12 + $0x1] ss:$0 sm:$0xff] }
 0x320   :  { %v2082_v55 = vadd.f32 %v2081_v54, %v2080_v58  ;;  %v2102_v5 = vmul.f32 %v3572_v32, %v3572_v32  ;;  %v2141_v14 = vsel %vm61_vm0, %v2103_v40, 0.0 }
 0x321   :  { %v2077_v48 = vadd.f32 %v2076_v56, %v2075_v44  ;;  %v2176_v39 = vadd.f32 1e-06, %v2161_v59  ;;  %v2136_v16 = vrot.slane %v2135_v9, 2  ;;  %v2330_v56 = vadd.f32 %v2329_v4, %v3565_v49 }
 0x322   :  { %v2083_v35 = vrot.slane %v2082_v55, 4  ;;  %v2140_v6 = vsel %vm61_vm0, %v2102_v5, 0.0 }
 0x323   :  { %v2078_v7 = vrot.slane %v2077_v48, 1  ;;  %v2142_v18 = vadd.f32 %v2141_v14, %v2140_v6  ;;  %2782 = vrsqrt.f32 %v2176_v39  ;;  %v2137_v1 = vadd.f32 %v2136_v16, %v2135_v9  ;;  %v2779_v0 = vpop.eup %2778 }
 0x324   :  { %v2084_v28 = vadd.f32 %v2083_v35, %v2082_v55  ;;  %v2781_v60 = vpop.eup %2780  ;;  %v2184_v19 = vmul.f32 %v2779_v0, %v2164_v61  ;;  %v2185_v31 = vmul.f32 %v2779_v0, %v2165_v25  ;;  %v2550_v0 = vld [vmem:[%s3706_s8 + $0x2] ss:$0 sm:$0xff] }
 0x325   :  { %v2079_v57 = vadd.f32 %v2078_v7, %v2077_v48  ;;  %v2143_v62 = vrot.slane %v2142_v18, 4  ;;  %v2138_v10 = vrot.slane %v2137_v1, 1  ;;  %v2186_v17 = vmul.f32 %v2781_v60, %v2166_v15 }
 0x326   :  { %v2085_v12 = vrot.slane %v2084_v28, 2  ;;  %v2187_v61 = vmul.f32 %v2781_v60, %v2167_v33  ;;  %v2229_v52 = vmul.f32 %v2548_v29, %v2184_v19  ;;  %v2230_v8 = vmul.f32 %v2548_v29, %v2185_v31 }
 0x327   :  { %v3605_v34 = vmul.f32 0.0625, %v2079_v57  ;;  %v2144_v46 = vadd.f32 %v2143_v62, %v2142_v18  ;;  %v2139_v38 = vadd.f32 %v2138_v10, %v2137_v1  ;;  %v2231_v50 = vmul.f32 %v2549_v30, %v2186_v17 }
 0x328   :  { %v2086_v13 = vadd.f32 %v2085_v12, %v2084_v28  ;;  %v2274_v20 = vadd.f32 %v2553_v36, %v2229_v52  ;;  %v2275_v37 = vadd.f32 %v2553_v36, %v2230_v8  ;;  %v2232_v21 = vmul.f32 %v2549_v30, %v2187_v61 }
 0x329   :  { %v2157_v47 = vmul.f32 %v3605_v34, %v3605_v34  ;;  %v2170_v51 = vsub.f32 %v3548_v22, %v3605_v34  ;;  %v2171_v15 = vsub.f32 %v3542_v27, %v3605_v34  ;;  %v2145_v25 = vrot.slane %v2144_v46, 2  ;;  %v2552_v34 = vld [vmem:[%s3706_s8 + $0x4] ss:$0 sm:$0xff] }
 0x32a   :  { %v2152_v44 = vmul.f32 0.0625, %v2139_v38  ;;  %v2087_v33 = vrot.slane %v2086_v13, 1  ;;  %v2284_v58 = vmul.f32 0.125, %v2274_v20  ;;  %v2276_v59 = vadd.f32 %v2554_v23, %v2231_v50  ;;  %v2556_v50 = vld [vmem:[%s3707_s12 + $0x3] ss:$0 sm:$0xff] }
 0x32b   :  { %v2146_v53 = vadd.f32 %v2145_v25, %v2144_v46  ;;  %v2285_v55 = vmul.f32 0.125, %v2275_v37  ;;  %v2277_v5 = vadd.f32 %v2554_v23, %v2232_v21  ;;  %v2345_v48 = vrot.slane %v3588_v11, 2 }
 0x32c   :  { %v2162_v54 = vsub.f32 %v2152_v44, %v2157_v47  ;;  %v2088_v40 = vadd.f32 %v2087_v33, %v2086_v13  ;;  %v2362_v16 = vmul.f32 %v2284_v58, %v2284_v58  ;;  %v2286_v35 = vmul.f32 0.125, %v2276_v59  ;;  %v2551_v44 = vld [vmem:[%s3706_s8 + $0x3] ss:$0 sm:$0xff] }
 0x32d   :  { %v2147_v9 = vrot.slane %v2146_v53, 1  ;;  %v2783_v14 = vpop.eup %2782  ;;  %v2287_v7 = vmul.f32 0.125, %v2277_v5  ;;  %v2338_v18 = vrot.slane %v3594_v3, 1  ;;  %v2363_v62 = vmul.f32 %v2285_v55, %v2285_v55 }
 0x32e   :  { %v2177_v41 = vadd.f32 1e-06, %v2162_v54  ;;  %v3624_v39 = vmul.f32 0.0625, %v2088_v40  ;;  %v2188_v6 = vmul.f32 %v2783_v14, %v2168_v43  ;;  %v2372_v43 = vsel %vm61_vm0, %v2362_v16, 0.0 }
 0x32f   :  { %v2148_v49 = vadd.f32 %v2147_v9, %v2146_v53  ;;  %v2364_v57 = vmul.f32 %v2286_v35, %v2286_v35  ;;  %2373 = vadd.xlane.f32.xlu0 %v2372_v43  ;;  %v2365_v29 = vmul.f32 %v2287_v7, %v2287_v7  ;;  %v2421_v60 = vmul.f32 %v2321_v2, %v2285_v55 }
 0x330   :  { %2784 = vrsqrt.f32 %v2177_v41  ;;  %v2158_v4 = vmul.f32 %v3624_v39, %v3624_v39  ;;  %v2172_v1 = vsub.f32 %v3572_v32, %v3624_v39  ;;  %v2173_v28 = vsub.f32 %v3562_v45, %v3624_v39  ;;  %v2555_v32 = vld [vmem:[%s3707_s12 + $0x2] ss:$0 sm:$0xff]  ;;  %v2557_v39 = vld [vmem:[%s3707_s12 + $0x4] ss:$0 sm:$0xff] }
 0x331   :  { %v2153_v26 = vmul.f32 0.0625, %v2148_v49  ;;  %v2420_v19 = vmul.f32 %v2321_v2, %v2284_v58  ;;  %v2423_v10 = vmul.f32 %v2330_v56, %v2287_v7  ;;  %v2378_v45 = vsel %vm61_vm0, %v2364_v57, 0.0 }
 0x332   :  { %v2422_v31 = vmul.f32 %v2330_v56, %v2286_v35  ;;  %v2233_v17 = vmul.f32 %v2550_v0, %v2188_v6  ;;  %2379 = vadd.xlane.f32.xlu1 %v2378_v45  ;;  %v2339_v46 = vadd.f32 %v2338_v18, %v3594_v3  ;;  %v2375_v30 = vsel %vm61_vm0, %v2363_v62, 0.0 }
 0x333   :  { %v2163_v12 = vsub.f32 %v2153_v26, %v2158_v4  ;;  %v2189_v2 = vmul.f32 %v2783_v14, %v2169_v63  ;;  %2376 = vadd.xlane.f32.xlu0 %v2375_v30  ;;  %v2346_v38 = vadd.f32 %v2345_v48, %v3588_v11  ;;  %v2381_v13 = vsel %vm61_vm0, %v2365_v29, 0.0 }
 0x334   :  { %v2278_v61 = vadd.f32 %v2555_v32, %v2233_v17  ;;  %v2431_v47 = vsel %vm61_vm0, %v2421_v60, 0.0  ;;  %v2428_v63 = vsel %vm61_vm0, %v2420_v19, 0.0  ;;  %v2437_v20 = vsel %vm61_vm0, %v2423_v10, 0.0  ;;  %v2354_v17 = vpop.xlane.xlu0 %2353 }
 0x335   :  { %v2178_v36 = vadd.f32 1e-06, %v2163_v12  ;;  %v2234_v8 = vmul.f32 %v2550_v0, %v2189_v2  ;;  %v2347_v24 = vrot.slane %v2346_v38, 1 }
 0x336   :  { %v2288_v52 = vmul.f32 0.125, %v2278_v61  ;;  %2382 = vadd.xlane.f32.xlu1 %v2381_v13 }
 0x337   :  { %2786 = vrsqrt.f32 %v2178_v36  ;;  %v2279_v3 = vadd.f32 %v2555_v32, %v2234_v8  ;;  %2432 = vadd.xlane.f32.xlu0 %v2431_v47  ;;  %v2348_v58 = vadd.f32 %v2347_v24, %v2346_v38  ;;  %v2355_v24 = vmul.f32 -1.0, %v2354_v17 }
 0x338   :  { %v2424_v25 = vmul.f32 %v2339_v46, %v2288_v52  ;;  %v2366_v37 = vmul.f32 %v2288_v52, %v2288_v52 }
 0x339   :  { %v2289_v11 = vmul.f32 0.125, %v2279_v3 }
 0x33a   :  { %v2785_v23 = vpop.eup %2784  ;;  %2429 = vadd.xlane.f32.xlu1 %v2428_v63  ;;  %v2440_v29 = vsel %vm61_vm0, %v2424_v25, 0.0 }
 0x33b   :  { %v2190_v42 = vmul.f32 %v2785_v23, %v2170_v51  ;;  %v2191_v33 = vmul.f32 %v2785_v23, %v2171_v15  ;;  %v2425_v56 = vmul.f32 %v2339_v46, %v2289_v11  ;;  %2438 = vadd.xlane.f32.xlu0 %v2437_v20  ;;  %v2367_v22 = vmul.f32 %v2289_v11, %v2289_v11  ;;  %v2359_v46 = vpop.xlane.xlu1 %2358 }
 0x33c   :  { %v2434_v51 = vsel %vm61_vm0, %v2422_v31, 0.0  ;;  %v2384_v15 = vsel %vm61_vm0, %v2366_v37, 0.0 }
 0x33d   :  { %v2235_v53 = vmul.f32 %v2551_v44, %v2190_v42  ;;  %v2236_v21 = vmul.f32 %v2551_v44, %v2191_v33  ;;  %v2387_v5 = vsel %vm61_vm0, %v2367_v22, 0.0  ;;  %v2443_v26 = vsel %vm61_vm0, %v2425_v56, 0.0 }
 0x33e   :  { %2435 = vadd.xlane.f32.xlu1 %v2434_v51  ;;  %v2475_v22 = vlaneseq }
 0x33f   :  { %v2281_v54 = vadd.f32 %v2556_v50, %v2236_v21  ;;  %v2280_v40 = vadd.f32 %v2556_v50, %v2235_v53  ;;  %2385 = vadd.xlane.f32.xlu0 %v2384_v15  ;;  %v2360_v21 = vmul.f32 0.16666667, %v2355_v24 }
 0x341   :  { %v2787_v27 = vpop.eup %2786  ;;  %v2291_v59 = vmul.f32 0.125, %v2281_v54  ;;  %v2290_v9 = vmul.f32 0.125, %v2280_v40 }
 0x342   :  { %v2192_v55 = vmul.f32 %v2787_v27, %v2172_v1  ;;  %v2193_v48 = vmul.f32 %v2787_v27, %v2173_v28  ;;  %2388 = vadd.xlane.f32.xlu1 %v2387_v5 }
 0x343   :  { %v2369_v14 = vmul.f32 %v2291_v59, %v2291_v59  ;;  %v2368_v41 = vmul.f32 %v2290_v9, %v2290_v9  ;;  %v2426_v16 = vmul.f32 %v2348_v58, %v2290_v9  ;;  %v2427_v35 = vmul.f32 %v2348_v58, %v2291_v59 }
 0x344   :  { %v2237_v6 = vmul.f32 %v2552_v34, %v2192_v55  ;;  %v2238_v49 = vmul.f32 %v2552_v34, %v2193_v48  ;;  %v2361_v9 = vadd.f32 %v2360_v21, %v2359_v46  ;;  %v2476_v48 = vshrl.u32 %v2475_v22, 7 }
 0x345   :  { %v2390_v7 = vsel %vm61_vm0, %v2368_v41, 0.0  ;;  %v2393_v1 = vsel %vm61_vm0, %v2369_v14, 0.0  ;;  %v2446_v32 = vsel %vm61_vm0, %v2426_v16, 0.0  ;;  %v2449_v12 = vsel %vm61_vm0, %v2427_v35, 0.0 }
 0x346   :  { %2391 = vadd.xlane.f32.xlu0 %v2390_v7  ;;  %v2283_v18 = vadd.f32 %v2557_v39, %v2238_v49  ;;  %v2282_v4 = vadd.f32 %v2557_v39, %v2237_v6  ;;  %2394 = vadd.xlane.f32.xlu1 %v2393_v1  ;;  %v2467_v35 = vstv %s3708_s13 }
 0x348   :  { %v2293_v28 = vmul.f32 0.125, %v2283_v18  ;;  %v2292_v0 = vmul.f32 0.125, %v2282_v4 }
 0x34a   :  { %2444 = vadd.xlane.f32.xlu0 %v2443_v26  ;;  %v2371_v43 = vmul.f32 %v2293_v28, %v2293_v28  ;;  %v2458_v57 = vmul.f32 %v2348_v58, %v2292_v0  ;;  %v2459_v62 = vmul.f32 %v2348_v58, %v2293_v28  ;;  %v2370_v60 = vmul.f32 %v2292_v0, %v2292_v0 }
 0x34b   :  { %2441 = vadd.xlane.f32.xlu1 %v2440_v29  ;;  %v2468_v28 = vsub.f32 %v2467_v35, %v2361_v9 }
 0x34c   :  { %v2399_v19 = vsel %vm61_vm0, %v2371_v43, 0.0  ;;  %v2396_v10 = vsel %vm61_vm0, %v2370_v60, 0.0  ;;  %v2460_v45 = vsel %vm61_vm0, %v2458_v57, 0.0  ;;  %v2463_v31 = vsel %vm61_vm0, %v2459_v62, 0.0 }
 0x34d   :  { %v2477_v43 = vsub.s32 0, %v2476_v48 }
 0x34e   :  { %2400 = vadd.xlane.f32.xlu0 %v2399_v19 }
 0x34f   :  { %2397 = vadd.xlane.f32.xlu1 %v2396_v10  ;;  %v2478_v19 = vrot.slane %v2468_v28, %v2477_v43 }
 0x352   :  { %2447 = vadd.xlane.f32.xlu0 %v2446_v32 }
 0x353   :  { %2450 = vadd.xlane.f32.xlu1 %v2449_v12 }
 0x356   :  { %2461 = vadd.xlane.f32.xlu0 %v2460_v45 }
 0x357   :  { %2464 = vadd.xlane.f32.xlu1 %v2463_v31 }
 0x3bc   :  { %v2374_v36 = vpop.xlane.xlu0 %2373 }
 0x3bd   :  { %v2402_v63 = vmul.f32 -1.0, %v2374_v36 }
 0x3bf   :  { %v2380_v30 = vpop.xlane.xlu1 %2379 }
 0x3c0   :  { %v2377_v61 = vpop.xlane.xlu0 %2376  ;;  %v2404_v11 = vmul.f32 -1.0, %v2380_v30 }
 0x3c1   :  { %v2403_v23 = vmul.f32 -1.0, %v2377_v61 }
 0x3c2   :  { %v2412_v51 = vadd.f32 %v2404_v11, %v2402_v63 }
 0x3c3   :  { %v2383_v2 = vpop.xlane.xlu1 %2382 }
 0x3c4   :  { %v2433_v38 = vpop.xlane.xlu0 %2432  ;;  %v2405_v44 = vmul.f32 -1.0, %v2383_v2 }
 0x3c6   :  { %v2416_v50 = vadd.f32 %v2405_v44, %v2403_v23 }
 0x3c7   :  { %v2430_v13 = vpop.xlane.xlu1 %2429 }
 0x3c8   :  { %v2439_v52 = vpop.xlane.xlu0 %2438 }
 0x3c9   :  { %v2455_v55 = vadd.f32 %v2439_v52, %v2433_v38 }
 0x3cb   :  { %v2436_v8 = vpop.xlane.xlu1 %2435 }
 0x3cc   :  { %v2386_v47 = vpop.xlane.xlu0 %2385  ;;  %v2452_v27 = vadd.f32 %v2436_v8, %v2430_v13 }
 0x3cd   :  { %v2406_v53 = vmul.f32 -1.0, %v2386_v47 }
 0x3cf   :  { %v2389_v3 = vpop.xlane.xlu1 %2388  ;;  %v2413_v34 = vadd.f32 %v2412_v51, %v2406_v53 }
 0x3d0   :  { %v2407_v33 = vmul.f32 -1.0, %v2389_v3 }
 0x3d2   :  { %v2417_v54 = vadd.f32 %v2416_v50, %v2407_v33 }
 0x3d3   :  { %v2392_v25 = vpop.xlane.xlu0 %2391  ;;  %v2395_v42 = vpop.xlane.xlu1 %2394 }
 0x3d4   :  { %v2409_v37 = vmul.f32 -1.0, %v2395_v42  ;;  %v2408_v40 = vmul.f32 -1.0, %v2392_v25 }
 0x3d6   :  { %v2418_v15 = vadd.f32 %v2417_v54, %v2409_v37  ;;  %v2414_v14 = vadd.f32 %v2413_v34, %v2408_v40 }
 0x3d7   :  { %v2445_v20 = vpop.xlane.xlu0 %2444 }
 0x3d8   :  { %v2442_v56 = vpop.xlane.xlu1 %2441  ;;  %v2456_v49 = vadd.f32 %v2455_v55, %v2445_v20 }
 0x3d9   :  { %v2453_v41 = vadd.f32 %v2452_v27, %v2442_v56 }
 0x3db   :  { %v2401_v58 = vpop.xlane.xlu0 %2400 }
 0x3dc   :  { %v2411_v59 = vmul.f32 -1.0, %v2401_v58  ;;  %v2398_v5 = vpop.xlane.xlu1 %2397 }
 0x3dd   :  { %v2410_v16 = vmul.f32 -1.0, %v2398_v5 }
 0x3de   :  { %v2419_v39 = vadd.f32 %v2418_v15, %v2411_v59 }
 0x3df   :  { %v2448_v6 = vpop.xlane.xlu0 %2447  ;;  %v2415_v18 = vadd.f32 %v2414_v14, %v2410_v16 }
 0x3e0   :  { %v2470_v7 = vmul.f32 0.16666667, %v2419_v39  ;;  %v2454_v4 = vadd.f32 %v2453_v41, %v2448_v6  ;;  %v2451_v1 = vpop.xlane.xlu1 %2450 }
 0x3e1   :  { %v2469_v0 = vmul.f32 0.16666667, %v2415_v18  ;;  %v2457_v26 = vadd.f32 %v2456_v49, %v2451_v1 }
 0x3e3   :  { %v2462_v57 = vpop.xlane.xlu0 %2461  ;;  %v2471_v62 = vadd.f32 %v2469_v0, %v2454_v4  ;;  %v2472_v29 = vadd.f32 %v2470_v7, %v2457_v26 }
 0x3e4   :  { %v2465_v60 = vpop.xlane.xlu1 %2464 }
 0x3e5   :  { %v2473_v10 = vadd.f32 %v2471_v62, %v2462_v57  ;;  %v2474_v32 = vadd.f32 %v2472_v29, %v2465_v60 }
 0x3e7   :  { %v2479_v12 = vsub.f32 %v2478_v19, %v2473_v10  ;;  %v2480_v45 = vsub.f32 %v2478_v19, %v2474_v32 }
 0x3e9   :  { %2482 = vst.msk [vmem:[%s3709_s15] sm:$0xff] %vm2481_vm3, %v2479_v12  ;;  %2483 = vst.msk [vmem:[%s3709_s15 + $0x8] sm:$0xff] %vm2481_vm3, %v2480_v45 }

</bundles_post_ra>
